<compile_context>
chip_gen: v7x
topology: tpu7x:2x2x1
jax: 0.10.0
libtpu: 0.0.40
codegen_flags: <defaults>
</compile_context>

<pallas_src>
import jax
import jax.numpy as jnp
import numpy as np
from jax.experimental import pallas as pl
from jax.experimental.pallas import tpu as pltpu

EPS = 1e-5
K = 3  # 3x3 conv


# ----------------------------------------------------------------------------
# In-kernel helpers
# ----------------------------------------------------------------------------
def _band_conv(src_ref, wb_ref, B, H, Lout):
    """3x3 conv as 3 banded MXU matmuls (one per kernel row).

    src_ref: (B, H+2, Lin)   vertically zero-padded activations, W*C on lanes
    wb_ref : (3, Lin, Lout)  banded per-dy weight matrices (horizontal padding
                             is folded into the band structure)
    returns: (B*H, Lout) f32
    """
    outs = []
    for b in range(B):
        acc = jnp.zeros((H, Lout), jnp.float32)
        for dy in range(K):
            acc = acc + jnp.dot(src_ref[b, dy:dy + H, :], wb_ref[dy],
                                preferred_element_type=jnp.float32)
        outs.append(acc)
    return jnp.concatenate(outs, axis=0)


def _bn_relu(acc, gamma, beta, W, C, n):
    """Training-mode BatchNorm (batch stats, biased var) + ReLU, lane-dense.

    acc   : (B*H, W*C) f32 conv output, channels interleaved on lanes (x*C + c)
    gamma : (1, C), beta: (1, C)
    """
    WC = W * C
    inv_n = 1.0 / float(n)
    # One fused sublane reduction produces both sum and sum-of-squares.
    both = jnp.concatenate([acc, acc * acc], axis=1)               # (B*H, 2*W*C)
    lane_sums = jnp.sum(both, axis=0, keepdims=True)               # (1, 2*W*C)
    # Fold the W lane-groups to per-channel totals with a tiny MXU matmul
    # (avoids a lane->sublane relayout; MXU has slack here).
    fold = jnp.tile(jnp.eye(C, dtype=jnp.float32), (W, 1))         # (W*C, C)
    ch_sum = jnp.dot(lane_sums[:, :WC], fold, preferred_element_type=jnp.float32)
    ch_ssq = jnp.dot(lane_sums[:, WC:], fold, preferred_element_type=jnp.float32)
    mean = ch_sum * inv_n                                          # (1, C)
    # TODO(synk): one-pass E[x^2] - mean^2 can cancel catastrophically for
    # large-magnitude activations; switch to two-pass/Welford at production scale.
    var = jnp.maximum(ch_ssq * inv_n - mean * mean, 0.0)
    scale_c = gamma * jax.lax.rsqrt(var + EPS)                     # (1, C)
    shift_c = beta - mean * scale_c                                # (1, C)
    scale = jnp.tile(scale_c, (1, W))                              # (1, W*C)
    shift = jnp.tile(shift_c, (1, W))
    return jnp.maximum(acc * scale + shift, 0.0)


def double_conv_kernel(x_ref, wb1_ref, g1_ref, b1_ref, wb2_ref, g2_ref, b2_ref,
                       o_ref, xp_ref, mid_ref):
    # x_ref  : (B, H, W*Cin)        VMEM   activations, W*C flattened on lanes
    # wb1_ref: (3, W*Cin, W*Cout)   VMEM   banded conv1 weights (per dy)
    # g1/b1  : (1, Cout)            VMEM
    # wb2_ref: (3, W*Cout, W*Cout)  VMEM   banded conv2 weights (per dy)
    # g2/b2  : (1, Cout)            VMEM
    # o_ref  : (B, H, W*Cout)       VMEM   lane-dense output
    # xp_ref : (B, H+2, W*Cin)      VMEM scratch (vertically padded input)
    # mid_ref: (B, H+2, W*Cout)     VMEM scratch (vertically padded intermediate)
    B, H, Lin = x_ref.shape
    Lmid = o_ref.shape[-1]
    C = g1_ref.shape[-1]
    W = Lmid // C
    n = B * H * W

    # Vertical zero padding only: two dense full-lane-width row stores per
    # batch plus a dense interior copy.  Horizontal padding is in the band
    # weights, so there are no lane-masked border writes at all.
    zrow_in = jnp.zeros((1, Lin), jnp.float32)
    for b in range(B):
        xp_ref[b, 0:1, :] = zrow_in
        xp_ref[b, H + 1:H + 2, :] = zrow_in
        xp_ref[b, 1:H + 1, :] = x_ref[b]

    # conv1 (MXU, banded) + BN1 (batch stats) + ReLU
    acc1 = _band_conv(xp_ref, wb1_ref, B, H, Lmid)                 # (B*H, W*Cout)
    h1 = _bn_relu(acc1, g1_ref[...], b1_ref[...], W, C, n)

    # stash intermediate (lane-dense, 128 lanes) with vertical zero rows
    zrow_mid = jnp.zeros((1, Lmid), jnp.float32)
    for b in range(B):
        mid_ref[b, 0:1, :] = zrow_mid
        mid_ref[b, H + 1:H + 2, :] = zrow_mid
        mid_ref[b, 1:H + 1, :] = h1[b * H:(b + 1) * H, :]

    # conv2 (MXU, banded) + BN2 + ReLU
    acc2 = _band_conv(mid_ref, wb2_ref, B, H, Lmid)
    h2 = _bn_relu(acc2, g2_ref[...], b2_ref[...], W, C, n)

    for b in range(B):
        o_ref[b, :, :] = h2[b * H:(b + 1) * H, :].astype(o_ref.dtype)


# ----------------------------------------------------------------------------
# Wrapper
# ----------------------------------------------------------------------------
def _band_weights(w, W):
    """OIHW conv weight (Co, Ci, 3, 3) -> (3, W*Ci, W*Co) banded matrices.

    band[dy][(x_in*Ci + ci), (x*Co + co)] = w[co, ci, dy, dx] where
    x_in = x + dx - 1 (and zero when x_in falls outside [0, W), which folds the
    horizontal conv padding into the weights).  Parameter preprocessing; in a
    real network this is hoisted/cached, not rebuilt per step.
    """
    mats = []
    for dy in range(K):
        m = None
        for dx in range(K):
            shift = jnp.eye(W, k=1 - dx, dtype=w.dtype)            # (W, W)
            blk = jnp.kron(shift, w[:, :, dy, dx].T)               # (W*Ci, W*Co)
            m = blk if m is None else m + blk
        mats.append(m)
    return jnp.stack(mats, axis=0)


@jax.jit
def double_conv_nhwc(x_nhwc, w1, g1, b1, w2, g2, b2):
    """Hot-path entry: x (B, H, W, Cin) NHWC f32 -> (B, H, W, Cout) f32."""
    B, H, W, Cin = x_nhwc.shape
    Cout = w1.shape[0]

    wb1 = _band_weights(w1, W)                       # (3, W*Cin,  W*Cout)
    wb2 = _band_weights(w2, W)                       # (3, W*Cout, W*Cout)
    x_flat = x_nhwc.reshape(B, H, W * Cin)           # contiguous, free reshape

    out_flat = pl.pallas_call(
        double_conv_kernel,
        out_shape=jax.ShapeDtypeStruct((B, H, W * Cout), jnp.float32),
        in_specs=[pl.BlockSpec(memory_space=pltpu.MemorySpace.VMEM)] * 7,
        out_specs=pl.BlockSpec(memory_space=pltpu.MemorySpace.VMEM),
        scratch_shapes=[
            pltpu.VMEM((B, H + 2, W * Cin), jnp.float32),   # padded input
            pltpu.VMEM((B, H + 2, W * Cout), jnp.float32),  # padded intermediate
        ],
    )(x_flat, wb1, g1.reshape(1, Cout), b1.reshape(1, Cout),
      wb2, g2.reshape(1, Cout), b2.reshape(1, Cout))
    return out_flat.reshape(B, H, W, Cout)


def double_conv(x_nchw, w1, g1, b1, w2, g2, b2):
    """PyTorch-layout adapter (test plumbing only).

    Real networks should keep activations NHWC across layers and call
    double_conv_nhwc directly; these transposes are full HBM round trips and
    are intentionally kept out of the kernel's hot path.
    """
    x_nhwc = jnp.transpose(x_nchw, (0, 2, 3, 1))
    out_nhwc = double_conv_nhwc(x_nhwc, w1, g1, b1, w2, g2, b2)
    return jnp.transpose(out_nhwc, (0, 3, 1, 2))


# ----------------------------------------------------------------------------
# Pure-JAX reference (PyTorch training-mode DoubleConv forward)
# ----------------------------------------------------------------------------
def ref_forward(x, w1, g1, b1, w2, g2, b2):
    def conv(h, w):
        return jax.lax.conv_general_dilated(
            h, w, window_strides=(1, 1), padding=((1, 1), (1, 1)),
            dimension_numbers=("NCHW", "OIHW", "NCHW"),
            precision=jax.lax.Precision.HIGHEST)

    def bn_relu(h, g, b):
        mean = jnp.mean(h, axis=(0, 2, 3), keepdims=True)
        var = jnp.mean((h - mean) ** 2, axis=(0, 2, 3), keepdims=True)
        y = (h - mean) * jax.lax.rsqrt(var + EPS)
        y = y * g.reshape(1, -1, 1, 1) + b.reshape(1, -1, 1, 1)
        return jnp.maximum(y, 0.0)

    h = bn_relu(conv(x, w1), g1, b1)
    return bn_relu(conv(h, w2), g2, b2)


if __name__ == "__main__":
    B, Cin, Cout, H, W = 2, 4, 8, 16, 16   # W * Cout = 128 -> lane-dense output

    key = jax.random.PRNGKey(0)
    kx, kw1, kw2, kg1, kb1, kg2, kb2 = jax.random.split(key, 7)

    x = jax.random.normal(kx, (B, Cin, H, W), dtype=jnp.float32)
    # Deterministic synthetic parameters (shapes per nn.Conv2d / nn.BatchNorm2d)
    w1 = 0.2 * jax.random.normal(kw1, (Cout, Cin, K, K), dtype=jnp.float32)
    w2 = 0.2 * jax.random.normal(kw2, (Cout, Cout, K, K), dtype=jnp.float32)
    g1 = 1.0 + 0.1 * jax.random.normal(kg1, (Cout,), dtype=jnp.float32)
    b1 = 0.1 * jax.random.normal(kb1, (Cout,), dtype=jnp.float32)
    g2 = 1.0 + 0.1 * jax.random.normal(kg2, (Cout,), dtype=jnp.float32)
    b2 = 0.1 * jax.random.normal(kb2, (Cout,), dtype=jnp.float32)

    out = jax.block_until_ready(double_conv(x, w1, g1, b1, w2, g2, b2))
    ref = jax.block_until_ready(ref_forward(x, w1, g1, b1, w2, g2, b2))

    np.testing.assert_allclose(np.asarray(out), np.asarray(ref),
                               rtol=2e-3, atol=2e-3)
    # TODO(synk): BatchNorm2d running_mean/running_var buffer updates (training
    # side effect) are not modeled; only the forward output is produced.
    print("KERNEL_OK")
</pallas_src>

<mosaic_0001>
module attributes {stable_mosaic.version = 11 : i64} {
  func.func @double_conv_kernel(%arg0: memref<2x16x64xf32, #tpu.memory_space<vmem>>, %arg1: memref<3x64x128xf32, #tpu.memory_space<vmem>>, %arg2: memref<1x8xf32, #tpu.memory_space<vmem>>, %arg3: memref<1x8xf32, #tpu.memory_space<vmem>>, %arg4: memref<3x128x128xf32, #tpu.memory_space<vmem>>, %arg5: memref<1x8xf32, #tpu.memory_space<vmem>>, %arg6: memref<1x8xf32, #tpu.memory_space<vmem>>, %arg7: memref<2x16x128xf32, #tpu.memory_space<vmem>>, %arg8: memref<2x18x64xf32, #tpu.memory_space<vmem>>, %arg9: memref<2x18x128xf32, #tpu.memory_space<vmem>>) attributes {dimension_semantics = [], scalar_prefetch = 0 : i64, scratch_operands = 2 : i64, tpu.core_type = #tpu.core_type<tc>} {
    %cst = arith.constant 0.000000e+00 : f32
    %0 = vector.broadcast %cst : f32 to vector<1x64xf32>
    %c0 = arith.constant 0 : index
    %c0_0 = arith.constant 0 : index
    %c0_1 = arith.constant 0 : index
    %1 = vector.load %arg8[%c0, %c0_0, %c0_1] : memref<2x18x64xf32, #tpu.memory_space<vmem>>, vector<1x1x64xf32>
    %2 = vector.shape_cast %1 : vector<1x1x64xf32> to vector<1x64xf32>
    %3 = vector.shape_cast %0 : vector<1x64xf32> to vector<1x1x64xf32>
    tpu.vector_store %arg8[%c0, %c0_0, %c0_1], %3 {strides = array<i32>} : memref<2x18x64xf32, #tpu.memory_space<vmem>>, vector<1x1x64xf32>,
    %c0_2 = arith.constant 0 : index
    %c17 = arith.constant 17 : index
    %c0_3 = arith.constant 0 : index
    %4 = vector.load %arg8[%c0_2, %c17, %c0_3] : memref<2x18x64xf32, #tpu.memory_space<vmem>>, vector<1x1x64xf32>
    %5 = vector.shape_cast %4 : vector<1x1x64xf32> to vector<1x64xf32>
    %6 = vector.shape_cast %0 : vector<1x64xf32> to vector<1x1x64xf32>
    tpu.vector_store %arg8[%c0_2, %c17, %c0_3], %6 {strides = array<i32>} : memref<2x18x64xf32, #tpu.memory_space<vmem>>, vector<1x1x64xf32>,
    %c0_4 = arith.constant 0 : index
    %c0_5 = arith.constant 0 : index
    %c0_6 = arith.constant 0 : index
    %7 = vector.load %arg0[%c0_4, %c0_5, %c0_6] : memref<2x16x64xf32, #tpu.memory_space<vmem>>, vector<1x16x64xf32>
    %8 = vector.shape_cast %7 : vector<1x16x64xf32> to vector<16x64xf32>
    %c0_7 = arith.constant 0 : index
    %c1 = arith.constant 1 : index
    %c0_8 = arith.constant 0 : index
    %9 = vector.load %arg8[%c0_7, %c1, %c0_8] : memref<2x18x64xf32, #tpu.memory_space<vmem>>, vector<1x16x64xf32>
    %10 = vector.shape_cast %9 : vector<1x16x64xf32> to vector<16x64xf32>
    %11 = vector.shape_cast %8 : vector<16x64xf32> to vector<1x16x64xf32>
    tpu.vector_store %arg8[%c0_7, %c1, %c0_8], %11 {strides = array<i32>} : memref<2x18x64xf32, #tpu.memory_space<vmem>>, vector<1x16x64xf32>,
    %c1_9 = arith.constant 1 : index
    %c0_10 = arith.constant 0 : index
    %c0_11 = arith.constant 0 : index
    %12 = vector.load %arg8[%c1_9, %c0_10, %c0_11] : memref<2x18x64xf32, #tpu.memory_space<vmem>>, vector<1x1x64xf32>
    %13 = vector.shape_cast %12 : vector<1x1x64xf32> to vector<1x64xf32>
    %14 = vector.shape_cast %0 : vector<1x64xf32> to vector<1x1x64xf32>
    tpu.vector_store %arg8[%c1_9, %c0_10, %c0_11], %14 {strides = array<i32>} : memref<2x18x64xf32, #tpu.memory_space<vmem>>, vector<1x1x64xf32>,
    %c1_12 = arith.constant 1 : index
    %c17_13 = arith.constant 17 : index
    %c0_14 = arith.constant 0 : index
    %15 = vector.load %arg8[%c1_12, %c17_13, %c0_14] : memref<2x18x64xf32, #tpu.memory_space<vmem>>, vector<1x1x64xf32>
    %16 = vector.shape_cast %15 : vector<1x1x64xf32> to vector<1x64xf32>
    %17 = vector.shape_cast %0 : vector<1x64xf32> to vector<1x1x64xf32>
    tpu.vector_store %arg8[%c1_12, %c17_13, %c0_14], %17 {strides = array<i32>} : memref<2x18x64xf32, #tpu.memory_space<vmem>>, vector<1x1x64xf32>,
    %c1_15 = arith.constant 1 : index
    %c0_16 = arith.constant 0 : index
    %c0_17 = arith.constant 0 : index
    %18 = vector.load %arg0[%c1_15, %c0_16, %c0_17] : memref<2x16x64xf32, #tpu.memory_space<vmem>>, vector<1x16x64xf32>
    %19 = vector.shape_cast %18 : vector<1x16x64xf32> to vector<16x64xf32>
    %c1_18 = arith.constant 1 : index
    %c1_19 = arith.constant 1 : index
    %c0_20 = arith.constant 0 : index
    %20 = vector.load %arg8[%c1_18, %c1_19, %c0_20] : memref<2x18x64xf32, #tpu.memory_space<vmem>>, vector<1x16x64xf32>
    %21 = vector.shape_cast %20 : vector<1x16x64xf32> to vector<16x64xf32>
    %22 = vector.shape_cast %19 : vector<16x64xf32> to vector<1x16x64xf32>
    tpu.vector_store %arg8[%c1_18, %c1_19, %c0_20], %22 {strides = array<i32>} : memref<2x18x64xf32, #tpu.memory_space<vmem>>, vector<1x16x64xf32>,
    %cst_21 = arith.constant 0.000000e+00 : f32
    %23 = vector.broadcast %cst_21 : f32 to vector<16x128xf32>
    %c0_22 = arith.constant 0 : index
    %c0_23 = arith.constant 0 : index
    %c0_24 = arith.constant 0 : index
    %24 = vector.load %arg8[%c0_22, %c0_23, %c0_24] : memref<2x18x64xf32, #tpu.memory_space<vmem>>, vector<1x16x64xf32>
    %25 = vector.shape_cast %24 : vector<1x16x64xf32> to vector<16x64xf32>
    %c0_25 = arith.constant 0 : index
    %c0_26 = arith.constant 0 : index
    %c0_27 = arith.constant 0 : index
    %26 = vector.load %arg1[%c0_25, %c0_26, %c0_27] : memref<3x64x128xf32, #tpu.memory_space<vmem>>, vector<1x64x128xf32>
    %27 = vector.shape_cast %26 : vector<1x64x128xf32> to vector<64x128xf32>
    %cst_28 = arith.constant dense<0.000000e+00> : vector<16x128xf32>
    %28 = tpu.matmul %25, %27, %cst_28 {dimension_numbers = #tpu.dot_dimension_numbers<[1], [0], [0], [1], [0, 0, 1, 1], [], []>} : vector<16x64xf32>, vector<64x128xf32>, vector<16x128xf32> -> vector<16x128xf32>
    %29 = arith.addf %23, %28 : vector<16x128xf32>
    %c0_29 = arith.constant 0 : index
    %c1_30 = arith.constant 1 : index
    %c0_31 = arith.constant 0 : index
    %30 = vector.load %arg8[%c0_29, %c1_30, %c0_31] : memref<2x18x64xf32, #tpu.memory_space<vmem>>, vector<1x16x64xf32>
    %31 = vector.shape_cast %30 : vector<1x16x64xf32> to vector<16x64xf32>
    %c1_32 = arith.constant 1 : index
    %c0_33 = arith.constant 0 : index
    %c0_34 = arith.constant 0 : index
    %32 = vector.load %arg1[%c1_32, %c0_33, %c0_34] : memref<3x64x128xf32, #tpu.memory_space<vmem>>, vector<1x64x128xf32>
    %33 = vector.shape_cast %32 : vector<1x64x128xf32> to vector<64x128xf32>
    %cst_35 = arith.constant dense<0.000000e+00> : vector<16x128xf32>
    %34 = tpu.matmul %31, %33, %cst_35 {dimension_numbers = #tpu.dot_dimension_numbers<[1], [0], [0], [1], [0, 0, 1, 1], [], []>} : vector<16x64xf32>, vector<64x128xf32>, vector<16x128xf32> -> vector<16x128xf32>
    %35 = arith.addf %29, %34 : vector<16x128xf32>
    %c0_36 = arith.constant 0 : index
    %c2 = arith.constant 2 : index
    %c0_37 = arith.constant 0 : index
    %36 = vector.load %arg8[%c0_36, %c2, %c0_37] : memref<2x18x64xf32, #tpu.memory_space<vmem>>, vector<1x16x64xf32>
    %37 = vector.shape_cast %36 : vector<1x16x64xf32> to vector<16x64xf32>
    %c2_38 = arith.constant 2 : index
    %c0_39 = arith.constant 0 : index
    %c0_40 = arith.constant 0 : index
    %38 = vector.load %arg1[%c2_38, %c0_39, %c0_40] : memref<3x64x128xf32, #tpu.memory_space<vmem>>, vector<1x64x128xf32>
    %39 = vector.shape_cast %38 : vector<1x64x128xf32> to vector<64x128xf32>
    %cst_41 = arith.constant dense<0.000000e+00> : vector<16x128xf32>
    %40 = tpu.matmul %37, %39, %cst_41 {dimension_numbers = #tpu.dot_dimension_numbers<[1], [0], [0], [1], [0, 0, 1, 1], [], []>} : vector<16x64xf32>, vector<64x128xf32>, vector<16x128xf32> -> vector<16x128xf32>
    %41 = arith.addf %35, %40 : vector<16x128xf32>
    %cst_42 = arith.constant 0.000000e+00 : f32
    %42 = vector.broadcast %cst_42 : f32 to vector<16x128xf32>
    %c1_43 = arith.constant 1 : index
    %c0_44 = arith.constant 0 : index
    %c0_45 = arith.constant 0 : index
    %43 = vector.load %arg8[%c1_43, %c0_44, %c0_45] : memref<2x18x64xf32, #tpu.memory_space<vmem>>, vector<1x16x64xf32>
    %44 = vector.shape_cast %43 : vector<1x16x64xf32> to vector<16x64xf32>
    %c0_46 = arith.constant 0 : index
    %c0_47 = arith.constant 0 : index
    %c0_48 = arith.constant 0 : index
    %45 = vector.load %arg1[%c0_46, %c0_47, %c0_48] : memref<3x64x128xf32, #tpu.memory_space<vmem>>, vector<1x64x128xf32>
    %46 = vector.shape_cast %45 : vector<1x64x128xf32> to vector<64x128xf32>
    %cst_49 = arith.constant dense<0.000000e+00> : vector<16x128xf32>
    %47 = tpu.matmul %44, %46, %cst_49 {dimension_numbers = #tpu.dot_dimension_numbers<[1], [0], [0], [1], [0, 0, 1, 1], [], []>} : vector<16x64xf32>, vector<64x128xf32>, vector<16x128xf32> -> vector<16x128xf32>
    %48 = arith.addf %42, %47 : vector<16x128xf32>
    %c1_50 = arith.constant 1 : index
    %c1_51 = arith.constant 1 : index
    %c0_52 = arith.constant 0 : index
    %49 = vector.load %arg8[%c1_50, %c1_51, %c0_52] : memref<2x18x64xf32, #tpu.memory_space<vmem>>, vector<1x16x64xf32>
    %50 = vector.shape_cast %49 : vector<1x16x64xf32> to vector<16x64xf32>
    %c1_53 = arith.constant 1 : index
    %c0_54 = arith.constant 0 : index
    %c0_55 = arith.constant 0 : index
    %51 = vector.load %arg1[%c1_53, %c0_54, %c0_55] : memref<3x64x128xf32, #tpu.memory_space<vmem>>, vector<1x64x128xf32>
    %52 = vector.shape_cast %51 : vector<1x64x128xf32> to vector<64x128xf32>
    %cst_56 = arith.constant dense<0.000000e+00> : vector<16x128xf32>
    %53 = tpu.matmul %50, %52, %cst_56 {dimension_numbers = #tpu.dot_dimension_numbers<[1], [0], [0], [1], [0, 0, 1, 1], [], []>} : vector<16x64xf32>, vector<64x128xf32>, vector<16x128xf32> -> vector<16x128xf32>
    %54 = arith.addf %48, %53 : vector<16x128xf32>
    %c1_57 = arith.constant 1 : index
    %c2_58 = arith.constant 2 : index
    %c0_59 = arith.constant 0 : index
    %55 = vector.load %arg8[%c1_57, %c2_58, %c0_59] : memref<2x18x64xf32, #tpu.memory_space<vmem>>, vector<1x16x64xf32>
    %56 = vector.shape_cast %55 : vector<1x16x64xf32> to vector<16x64xf32>
    %c2_60 = arith.constant 2 : index
    %c0_61 = arith.constant 0 : index
    %c0_62 = arith.constant 0 : index
    %57 = vector.load %arg1[%c2_60, %c0_61, %c0_62] : memref<3x64x128xf32, #tpu.memory_space<vmem>>, vector<1x64x128xf32>
    %58 = vector.shape_cast %57 : vector<1x64x128xf32> to vector<64x128xf32>
    %cst_63 = arith.constant dense<0.000000e+00> : vector<16x128xf32>
    %59 = tpu.matmul %56, %58, %cst_63 {dimension_numbers = #tpu.dot_dimension_numbers<[1], [0], [0], [1], [0, 0, 1, 1], [], []>} : vector<16x64xf32>, vector<64x128xf32>, vector<16x128xf32> -> vector<16x128xf32>
    %60 = arith.addf %54, %59 : vector<16x128xf32>
    %61 = tpu.concatenate %41, %60 in 0 : vector<16x128xf32>, vector<16x128xf32> -> vector<32x128xf32>
    %c0_64 = arith.constant 0 : index
    %c0_65 = arith.constant 0 : index
    %62 = vector.load %arg2[%c0_64, %c0_65] : memref<1x8xf32, #tpu.memory_space<vmem>>, vector<1x8xf32>
    %c0_66 = arith.constant 0 : index
    %c0_67 = arith.constant 0 : index
    %63 = vector.load %arg3[%c0_66, %c0_67] : memref<1x8xf32, #tpu.memory_space<vmem>>, vector<1x8xf32>
    %64 = arith.mulf %61, %61 : vector<32x128xf32>
    %65 = tpu.concatenate %61, %64 in 1 : vector<32x128xf32>, vector<32x128xf32> -> vector<32x256xf32>
    %cst_68 = arith.constant dense<0.000000e+00> : vector<256xf32>
    %66 = vector.multi_reduction <add>, %65, %cst_68 [0] : vector<32x256xf32> to vector<256xf32>
    %67 = vector.shape_cast %66 : vector<256xf32> to vector<1x256xf32>
    %68 = tpu.iota {dimensions = array<i32: 0>} : vector<8x8xi32>
    %69 = tpu.iota {dimensions = array<i32: 1>} : vector<8x8xi32>
    %c0_i32 = arith.constant 0 : i32
    %70 = vector.broadcast %c0_i32 : i32 to vector<8x8xi32>
    %71 = arith.addi %68, %70 : vector<8x8xi32>
    %72 = arith.cmpi eq, %71, %69 : vector<8x8xi32>
    %73 = arith.extui %72 : vector<8x8xi1> to vector<8x8xi32>
    %74 = arith.sitofp %73 : vector<8x8xi32> to vector<8x8xf32>
    %75 = tpu.concatenate %74, %74, %74, %74, %74, %74, %74, %74, %74, %74, %74, %74, %74, %74, %74, %74 in 0 : vector<8x8xf32>, vector<8x8xf32>, vector<8x8xf32>, vector<8x8xf32>, vector<8x8xf32>, vector<8x8xf32>, vector<8x8xf32>, vector<8x8xf32>, vector<8x8xf32>, vector<8x8xf32>, vector<8x8xf32>, vector<8x8xf32>, vector<8x8xf32>, vector<8x8xf32>, vector<8x8xf32>, vector<8x8xf32> -> vector<128x8xf32>
    %76 = vector.extract_strided_slice %67 {offsets = [0, 0], sizes = [1, 128], strides = [1, 1]} : vector<1x256xf32> to vector<1x128xf32>
    %cst_69 = arith.constant dense<0.000000e+00> : vector<1x8xf32>
    %77 = tpu.matmul %76, %75, %cst_69 {dimension_numbers = #tpu.dot_dimension_numbers<[1], [0], [0], [1], [0, 0, 1, 1], [], []>} : vector<1x128xf32>, vector<128x8xf32>, vector<1x8xf32> -> vector<1x8xf32>
    %78 = vector.extract_strided_slice %67 {offsets = [0, 128], sizes = [1, 128], strides = [1, 1]} : vector<1x256xf32> to vector<1x128xf32>
    %cst_70 = arith.constant dense<0.000000e+00> : vector<1x8xf32>
    %79 = tpu.matmul %78, %75, %cst_70 {dimension_numbers = #tpu.dot_dimension_numbers<[1], [0], [0], [1], [0, 0, 1, 1], [], []>} : vector<1x128xf32>, vector<128x8xf32>, vector<1x8xf32> -> vector<1x8xf32>
    %cst_71 = arith.constant 0.001953125 : f32
    %80 = vector.broadcast %cst_71 : f32 to vector<1x8xf32>
    %81 = arith.mulf %77, %80 : vector<1x8xf32>
    %cst_72 = arith.constant 0.001953125 : f32
    %82 = vector.broadcast %cst_72 : f32 to vector<1x8xf32>
    %83 = arith.mulf %79, %82 : vector<1x8xf32>
    %84 = arith.mulf %81, %81 : vector<1x8xf32>
    %85 = arith.subf %83, %84 : vector<1x8xf32>
    %cst_73 = arith.constant 0.000000e+00 : f32
    %86 = vector.broadcast %cst_73 : f32 to vector<1x8xf32>
    %87 = arith.maximumf %85, %86 : vector<1x8xf32>
    %cst_74 = arith.constant 9.99999974E-6 : f32
    %88 = vector.broadcast %cst_74 : f32 to vector<1x8xf32>
    %89 = arith.addf %87, %88 : vector<1x8xf32>
    %90 = math.rsqrt %89 : vector<1x8xf32>
    %91 = arith.mulf %62, %90 : vector<1x8xf32>
    %92 = arith.mulf %81, %91 : vector<1x8xf32>
    %93 = arith.subf %63, %92 : vector<1x8xf32>
    %94 = tpu.concatenate %91, %91, %91, %91, %91, %91, %91, %91, %91, %91, %91, %91, %91, %91, %91, %91 in 1 : vector<1x8xf32>, vector<1x8xf32>, vector<1x8xf32>, vector<1x8xf32>, vector<1x8xf32>, vector<1x8xf32>, vector<1x8xf32>, vector<1x8xf32>, vector<1x8xf32>, vector<1x8xf32>, vector<1x8xf32>, vector<1x8xf32>, vector<1x8xf32>, vector<1x8xf32>, vector<1x8xf32>, vector<1x8xf32> -> vector<1x128xf32>
    %95 = tpu.concatenate %93, %93, %93, %93, %93, %93, %93, %93, %93, %93, %93, %93, %93, %93, %93, %93 in 1 : vector<1x8xf32>, vector<1x8xf32>, vector<1x8xf32>, vector<1x8xf32>, vector<1x8xf32>, vector<1x8xf32>, vector<1x8xf32>, vector<1x8xf32>, vector<1x8xf32>, vector<1x8xf32>, vector<1x8xf32>, vector<1x8xf32>, vector<1x8xf32>, vector<1x8xf32>, vector<1x8xf32>, vector<1x8xf32> -> vector<1x128xf32>
    %96 = vector.broadcast %94 : vector<1x128xf32> to vector<32x128xf32>
    %97 = arith.mulf %61, %96 : vector<32x128xf32>
    %98 = vector.broadcast %95 : vector<1x128xf32> to vector<32x128xf32>
    %99 = arith.addf %97, %98 : vector<32x128xf32>
    %cst_75 = arith.constant 0.000000e+00 : f32
    %100 = vector.broadcast %cst_75 : f32 to vector<32x128xf32>
    %101 = arith.maximumf %99, %100 : vector<32x128xf32>
    %cst_76 = arith.constant 0.000000e+00 : f32
    %102 = vector.broadcast %cst_76 : f32 to vector<1x128xf32>
    %c0_77 = arith.constant 0 : index
    %c0_78 = arith.constant 0 : index
    %c0_79 = arith.constant 0 : index
    %103 = vector.load %arg9[%c0_77, %c0_78, %c0_79] : memref<2x18x128xf32, #tpu.memory_space<vmem>>, vector<1x1x128xf32>
    %104 = vector.shape_cast %103 : vector<1x1x128xf32> to vector<1x128xf32>
    %105 = vector.shape_cast %102 : vector<1x128xf32> to vector<1x1x128xf32>
    tpu.vector_store %arg9[%c0_77, %c0_78, %c0_79], %105 {strides = array<i32>} : memref<2x18x128xf32, #tpu.memory_space<vmem>>, vector<1x1x128xf32>,
    %c0_80 = arith.constant 0 : index
    %c17_81 = arith.constant 17 : index
    %c0_82 = arith.constant 0 : index
    %106 = vector.load %arg9[%c0_80, %c17_81, %c0_82] : memref<2x18x128xf32, #tpu.memory_space<vmem>>, vector<1x1x128xf32>
    %107 = vector.shape_cast %106 : vector<1x1x128xf32> to vector<1x128xf32>
    %108 = vector.shape_cast %102 : vector<1x128xf32> to vector<1x1x128xf32>
    tpu.vector_store %arg9[%c0_80, %c17_81, %c0_82], %108 {strides = array<i32>} : memref<2x18x128xf32, #tpu.memory_space<vmem>>, vector<1x1x128xf32>,
    %109 = vector.extract_strided_slice %101 {offsets = [0, 0], sizes = [16, 128], strides = [1, 1]} : vector<32x128xf32> to vector<16x128xf32>
    %c0_83 = arith.constant 0 : index
    %c1_84 = arith.constant 1 : index
    %c0_85 = arith.constant 0 : index
    %110 = vector.load %arg9[%c0_83, %c1_84, %c0_85] : memref<2x18x128xf32, #tpu.memory_space<vmem>>, vector<1x16x128xf32>
    %111 = vector.shape_cast %110 : vector<1x16x128xf32> to vector<16x128xf32>
    %112 = vector.shape_cast %109 : vector<16x128xf32> to vector<1x16x128xf32>
    tpu.vector_store %arg9[%c0_83, %c1_84, %c0_85], %112 {strides = array<i32>} : memref<2x18x128xf32, #tpu.memory_space<vmem>>, vector<1x16x128xf32>,
    %c1_86 = arith.constant 1 : index
    %c0_87 = arith.constant 0 : index
    %c0_88 = arith.constant 0 : index
    %113 = vector.load %arg9[%c1_86, %c0_87, %c0_88] : memref<2x18x128xf32, #tpu.memory_space<vmem>>, vector<1x1x128xf32>
    %114 = vector.shape_cast %113 : vector<1x1x128xf32> to vector<1x128xf32>
    %115 = vector.shape_cast %102 : vector<1x128xf32> to vector<1x1x128xf32>
    tpu.vector_store %arg9[%c1_86, %c0_87, %c0_88], %115 {strides = array<i32>} : memref<2x18x128xf32, #tpu.memory_space<vmem>>, vector<1x1x128xf32>,
    %c1_89 = arith.constant 1 : index
    %c17_90 = arith.constant 17 : index
    %c0_91 = arith.constant 0 : index
    %116 = vector.load %arg9[%c1_89, %c17_90, %c0_91] : memref<2x18x128xf32, #tpu.memory_space<vmem>>, vector<1x1x128xf32>
    %117 = vector.shape_cast %116 : vector<1x1x128xf32> to vector<1x128xf32>
    %118 = vector.shape_cast %102 : vector<1x128xf32> to vector<1x1x128xf32>
    tpu.vector_store %arg9[%c1_89, %c17_90, %c0_91], %118 {strides = array<i32>} : memref<2x18x128xf32, #tpu.memory_space<vmem>>, vector<1x1x128xf32>,
    %119 = vector.extract_strided_slice %101 {offsets = [16, 0], sizes = [16, 128], strides = [1, 1]} : vector<32x128xf32> to vector<16x128xf32>
    %c1_92 = arith.constant 1 : index
    %c1_93 = arith.constant 1 : index
    %c0_94 = arith.constant 0 : index
    %120 = vector.load %arg9[%c1_92, %c1_93, %c0_94] : memref<2x18x128xf32, #tpu.memory_space<vmem>>, vector<1x16x128xf32>
    %121 = vector.shape_cast %120 : vector<1x16x128xf32> to vector<16x128xf32>
    %122 = vector.shape_cast %119 : vector<16x128xf32> to vector<1x16x128xf32>
    tpu.vector_store %arg9[%c1_92, %c1_93, %c0_94], %122 {strides = array<i32>} : memref<2x18x128xf32, #tpu.memory_space<vmem>>, vector<1x16x128xf32>,
    %cst_95 = arith.constant 0.000000e+00 : f32
    %123 = vector.broadcast %cst_95 : f32 to vector<16x128xf32>
    %c0_96 = arith.constant 0 : index
    %c0_97 = arith.constant 0 : index
    %c0_98 = arith.constant 0 : index
    %124 = vector.load %arg9[%c0_96, %c0_97, %c0_98] : memref<2x18x128xf32, #tpu.memory_space<vmem>>, vector<1x16x128xf32>
    %125 = vector.shape_cast %124 : vector<1x16x128xf32> to vector<16x128xf32>
    %c0_99 = arith.constant 0 : index
    %c0_100 = arith.constant 0 : index
    %c0_101 = arith.constant 0 : index
    %126 = vector.load %arg4[%c0_99, %c0_100, %c0_101] : memref<3x128x128xf32, #tpu.memory_space<vmem>>, vector<1x128x128xf32>
    %127 = vector.shape_cast %126 : vector<1x128x128xf32> to vector<128x128xf32>
    %cst_102 = arith.constant dense<0.000000e+00> : vector<16x128xf32>
    %128 = tpu.matmul %125, %127, %cst_102 {dimension_numbers = #tpu.dot_dimension_numbers<[1], [0], [0], [1], [0, 0, 1, 1], [], []>} : vector<16x128xf32>, vector<128x128xf32>, vector<16x128xf32> -> vector<16x128xf32>
    %129 = arith.addf %123, %128 : vector<16x128xf32>
    %c0_103 = arith.constant 0 : index
    %c1_104 = arith.constant 1 : index
    %c0_105 = arith.constant 0 : index
    %130 = vector.load %arg9[%c0_103, %c1_104, %c0_105] : memref<2x18x128xf32, #tpu.memory_space<vmem>>, vector<1x16x128xf32>
    %131 = vector.shape_cast %130 : vector<1x16x128xf32> to vector<16x128xf32>
    %c1_106 = arith.constant 1 : index
    %c0_107 = arith.constant 0 : index
    %c0_108 = arith.constant 0 : index
    %132 = vector.load %arg4[%c1_106, %c0_107, %c0_108] : memref<3x128x128xf32, #tpu.memory_space<vmem>>, vector<1x128x128xf32>
    %133 = vector.shape_cast %132 : vector<1x128x128xf32> to vector<128x128xf32>
    %cst_109 = arith.constant dense<0.000000e+00> : vector<16x128xf32>
    %134 = tpu.matmul %131, %133, %cst_109 {dimension_numbers = #tpu.dot_dimension_numbers<[1], [0], [0], [1], [0, 0, 1, 1], [], []>} : vector<16x128xf32>, vector<128x128xf32>, vector<16x128xf32> -> vector<16x128xf32>
    %135 = arith.addf %129, %134 : vector<16x128xf32>
    %c0_110 = arith.constant 0 : index
    %c2_111 = arith.constant 2 : index
    %c0_112 = arith.constant 0 : index
    %136 = vector.load %arg9[%c0_110, %c2_111, %c0_112] : memref<2x18x128xf32, #tpu.memory_space<vmem>>, vector<1x16x128xf32>
    %137 = vector.shape_cast %136 : vector<1x16x128xf32> to vector<16x128xf32>
    %c2_113 = arith.constant 2 : index
    %c0_114 = arith.constant 0 : index
    %c0_115 = arith.constant 0 : index
    %138 = vector.load %arg4[%c2_113, %c0_114, %c0_115] : memref<3x128x128xf32, #tpu.memory_space<vmem>>, vector<1x128x128xf32>
    %139 = vector.shape_cast %138 : vector<1x128x128xf32> to vector<128x128xf32>
    %cst_116 = arith.constant dense<0.000000e+00> : vector<16x128xf32>
    %140 = tpu.matmul %137, %139, %cst_116 {dimension_numbers = #tpu.dot_dimension_numbers<[1], [0], [0], [1], [0, 0, 1, 1], [], []>} : vector<16x128xf32>, vector<128x128xf32>, vector<16x128xf32> -> vector<16x128xf32>
    %141 = arith.addf %135, %140 : vector<16x128xf32>
    %cst_117 = arith.constant 0.000000e+00 : f32
    %142 = vector.broadcast %cst_117 : f32 to vector<16x128xf32>
    %c1_118 = arith.constant 1 : index
    %c0_119 = arith.constant 0 : index
    %c0_120 = arith.constant 0 : index
    %143 = vector.load %arg9[%c1_118, %c0_119, %c0_120] : memref<2x18x128xf32, #tpu.memory_space<vmem>>, vector<1x16x128xf32>
    %144 = vector.shape_cast %143 : vector<1x16x128xf32> to vector<16x128xf32>
    %c0_121 = arith.constant 0 : index
    %c0_122 = arith.constant 0 : index
    %c0_123 = arith.constant 0 : index
    %145 = vector.load %arg4[%c0_121, %c0_122, %c0_123] : memref<3x128x128xf32, #tpu.memory_space<vmem>>, vector<1x128x128xf32>
    %146 = vector.shape_cast %145 : vector<1x128x128xf32> to vector<128x128xf32>
    %cst_124 = arith.constant dense<0.000000e+00> : vector<16x128xf32>
    %147 = tpu.matmul %144, %146, %cst_124 {dimension_numbers = #tpu.dot_dimension_numbers<[1], [0], [0], [1], [0, 0, 1, 1], [], []>} : vector<16x128xf32>, vector<128x128xf32>, vector<16x128xf32> -> vector<16x128xf32>
    %148 = arith.addf %142, %147 : vector<16x128xf32>
    %c1_125 = arith.constant 1 : index
    %c1_126 = arith.constant 1 : index
    %c0_127 = arith.constant 0 : index
    %149 = vector.load %arg9[%c1_125, %c1_126, %c0_127] : memref<2x18x128xf32, #tpu.memory_space<vmem>>, vector<1x16x128xf32>
    %150 = vector.shape_cast %149 : vector<1x16x128xf32> to vector<16x128xf32>
    %c1_128 = arith.constant 1 : index
    %c0_129 = arith.constant 0 : index
    %c0_130 = arith.constant 0 : index
    %151 = vector.load %arg4[%c1_128, %c0_129, %c0_130] : memref<3x128x128xf32, #tpu.memory_space<vmem>>, vector<1x128x128xf32>
    %152 = vector.shape_cast %151 : vector<1x128x128xf32> to vector<128x128xf32>
    %cst_131 = arith.constant dense<0.000000e+00> : vector<16x128xf32>
    %153 = tpu.matmul %150, %152, %cst_131 {dimension_numbers = #tpu.dot_dimension_numbers<[1], [0], [0], [1], [0, 0, 1, 1], [], []>} : vector<16x128xf32>, vector<128x128xf32>, vector<16x128xf32> -> vector<16x128xf32>
    %154 = arith.addf %148, %153 : vector<16x128xf32>
    %c1_132 = arith.constant 1 : index
    %c2_133 = arith.constant 2 : index
    %c0_134 = arith.constant 0 : index
    %155 = vector.load %arg9[%c1_132, %c2_133, %c0_134] : memref<2x18x128xf32, #tpu.memory_space<vmem>>, vector<1x16x128xf32>
    %156 = vector.shape_cast %155 : vector<1x16x128xf32> to vector<16x128xf32>
    %c2_135 = arith.constant 2 : index
    %c0_136 = arith.constant 0 : index
    %c0_137 = arith.constant 0 : index
    %157 = vector.load %arg4[%c2_135, %c0_136, %c0_137] : memref<3x128x128xf32, #tpu.memory_space<vmem>>, vector<1x128x128xf32>
    %158 = vector.shape_cast %157 : vector<1x128x128xf32> to vector<128x128xf32>
    %cst_138 = arith.constant dense<0.000000e+00> : vector<16x128xf32>
    %159 = tpu.matmul %156, %158, %cst_138 {dimension_numbers = #tpu.dot_dimension_numbers<[1], [0], [0], [1], [0, 0, 1, 1], [], []>} : vector<16x128xf32>, vector<128x128xf32>, vector<16x128xf32> -> vector<16x128xf32>
    %160 = arith.addf %154, %159 : vector<16x128xf32>
    %161 = tpu.concatenate %141, %160 in 0 : vector<16x128xf32>, vector<16x128xf32> -> vector<32x128xf32>
    %c0_139 = arith.constant 0 : index
    %c0_140 = arith.constant 0 : index
    %162 = vector.load %arg5[%c0_139, %c0_140] : memref<1x8xf32, #tpu.memory_space<vmem>>, vector<1x8xf32>
    %c0_141 = arith.constant 0 : index
    %c0_142 = arith.constant 0 : index
    %163 = vector.load %arg6[%c0_141, %c0_142] : memref<1x8xf32, #tpu.memory_space<vmem>>, vector<1x8xf32>
    %164 = arith.mulf %161, %161 : vector<32x128xf32>
    %165 = tpu.concatenate %161, %164 in 1 : vector<32x128xf32>, vector<32x128xf32> -> vector<32x256xf32>
    %cst_143 = arith.constant dense<0.000000e+00> : vector<256xf32>
    %166 = vector.multi_reduction <add>, %165, %cst_143 [0] : vector<32x256xf32> to vector<256xf32>
    %167 = vector.shape_cast %166 : vector<256xf32> to vector<1x256xf32>
    %168 = tpu.iota {dimensions = array<i32: 0>} : vector<8x8xi32>
    %169 = tpu.iota {dimensions = array<i32: 1>} : vector<8x8xi32>
    %c0_i32_144 = arith.constant 0 : i32
    %170 = vector.broadcast %c0_i32_144 : i32 to vector<8x8xi32>
    %171 = arith.addi %168, %170 : vector<8x8xi32>
    %172 = arith.cmpi eq, %171, %169 : vector<8x8xi32>
    %173 = arith.extui %172 : vector<8x8xi1> to vector<8x8xi32>
    %174 = arith.sitofp %173 : vector<8x8xi32> to vector<8x8xf32>
    %175 = tpu.concatenate %174, %174, %174, %174, %174, %174, %174, %174, %174, %174, %174, %174, %174, %174, %174, %174 in 0 : vector<8x8xf32>, vector<8x8xf32>, vector<8x8xf32>, vector<8x8xf32>, vector<8x8xf32>, vector<8x8xf32>, vector<8x8xf32>, vector<8x8xf32>, vector<8x8xf32>, vector<8x8xf32>, vector<8x8xf32>, vector<8x8xf32>, vector<8x8xf32>, vector<8x8xf32>, vector<8x8xf32>, vector<8x8xf32> -> vector<128x8xf32>
    %176 = vector.extract_strided_slice %167 {offsets = [0, 0], sizes = [1, 128], strides = [1, 1]} : vector<1x256xf32> to vector<1x128xf32>
    %cst_145 = arith.constant dense<0.000000e+00> : vector<1x8xf32>
    %177 = tpu.matmul %176, %175, %cst_145 {dimension_numbers = #tpu.dot_dimension_numbers<[1], [0], [0], [1], [0, 0, 1, 1], [], []>} : vector<1x128xf32>, vector<128x8xf32>, vector<1x8xf32> -> vector<1x8xf32>
    %178 = vector.extract_strided_slice %167 {offsets = [0, 128], sizes = [1, 128], strides = [1, 1]} : vector<1x256xf32> to vector<1x128xf32>
    %cst_146 = arith.constant dense<0.000000e+00> : vector<1x8xf32>
    %179 = tpu.matmul %178, %175, %cst_146 {dimension_numbers = #tpu.dot_dimension_numbers<[1], [0], [0], [1], [0, 0, 1, 1], [], []>} : vector<1x128xf32>, vector<128x8xf32>, vector<1x8xf32> -> vector<1x8xf32>
    %cst_147 = arith.constant 0.001953125 : f32
    %180 = vector.broadcast %cst_147 : f32 to vector<1x8xf32>
    %181 = arith.mulf %177, %180 : vector<1x8xf32>
    %cst_148 = arith.constant 0.001953125 : f32
    %182 = vector.broadcast %cst_148 : f32 to vector<1x8xf32>
    %183 = arith.mulf %179, %182 : vector<1x8xf32>
    %184 = arith.mulf %181, %181 : vector<1x8xf32>
    %185 = arith.subf %183, %184 : vector<1x8xf32>
    %cst_149 = arith.constant 0.000000e+00 : f32
    %186 = vector.broadcast %cst_149 : f32 to vector<1x8xf32>
    %187 = arith.maximumf %185, %186 : vector<1x8xf32>
    %cst_150 = arith.constant 9.99999974E-6 : f32
    %188 = vector.broadcast %cst_150 : f32 to vector<1x8xf32>
    %189 = arith.addf %187, %188 : vector<1x8xf32>
    %190 = math.rsqrt %189 : vector<1x8xf32>
    %191 = arith.mulf %162, %190 : vector<1x8xf32>
    %192 = arith.mulf %181, %191 : vector<1x8xf32>
    %193 = arith.subf %163, %192 : vector<1x8xf32>
    %194 = tpu.concatenate %191, %191, %191, %191, %191, %191, %191, %191, %191, %191, %191, %191, %191, %191, %191, %191 in 1 : vector<1x8xf32>, vector<1x8xf32>, vector<1x8xf32>, vector<1x8xf32>, vector<1x8xf32>, vector<1x8xf32>, vector<1x8xf32>, vector<1x8xf32>, vector<1x8xf32>, vector<1x8xf32>, vector<1x8xf32>, vector<1x8xf32>, vector<1x8xf32>, vector<1x8xf32>, vector<1x8xf32>, vector<1x8xf32> -> vector<1x128xf32>
    %195 = tpu.concatenate %193, %193, %193, %193, %193, %193, %193, %193, %193, %193, %193, %193, %193, %193, %193, %193 in 1 : vector<1x8xf32>, vector<1x8xf32>, vector<1x8xf32>, vector<1x8xf32>, vector<1x8xf32>, vector<1x8xf32>, vector<1x8xf32>, vector<1x8xf32>, vector<1x8xf32>, vector<1x8xf32>, vector<1x8xf32>, vector<1x8xf32>, vector<1x8xf32>, vector<1x8xf32>, vector<1x8xf32>, vector<1x8xf32> -> vector<1x128xf32>
    %196 = vector.broadcast %194 : vector<1x128xf32> to vector<32x128xf32>
    %197 = arith.mulf %161, %196 : vector<32x128xf32>
    %198 = vector.broadcast %195 : vector<1x128xf32> to vector<32x128xf32>
    %199 = arith.addf %197, %198 : vector<32x128xf32>
    %cst_151 = arith.constant 0.000000e+00 : f32
    %200 = vector.broadcast %cst_151 : f32 to vector<32x128xf32>
    %201 = arith.maximumf %199, %200 : vector<32x128xf32>
    %202 = vector.extract_strided_slice %201 {offsets = [0, 0], sizes = [16, 128], strides = [1, 1]} : vector<32x128xf32> to vector<16x128xf32>
    %c0_152 = arith.constant 0 : index
    %c0_153 = arith.constant 0 : index
    %c0_154 = arith.constant 0 : index
    %203 = vector.load %arg7[%c0_152, %c0_153, %c0_154] : memref<2x16x128xf32, #tpu.memory_space<vmem>>, vector<1x16x128xf32>
    %204 = vector.shape_cast %203 : vector<1x16x128xf32> to vector<16x128xf32>
    %205 = vector.shape_cast %202 : vector<16x128xf32> to vector<1x16x128xf32>
    tpu.vector_store %arg7[%c0_152, %c0_153, %c0_154], %205 {strides = array<i32>} : memref<2x16x128xf32, #tpu.memory_space<vmem>>, vector<1x16x128xf32>,
    %206 = vector.extract_strided_slice %201 {offsets = [16, 0], sizes = [16, 128], strides = [1, 1]} : vector<32x128xf32> to vector<16x128xf32>
    %c1_155 = arith.constant 1 : index
    %c0_156 = arith.constant 0 : index
    %c0_157 = arith.constant 0 : index
    %207 = vector.load %arg7[%c1_155, %c0_156, %c0_157] : memref<2x16x128xf32, #tpu.memory_space<vmem>>, vector<1x16x128xf32>
    %208 = vector.shape_cast %207 : vector<1x16x128xf32> to vector<16x128xf32>
    %209 = vector.shape_cast %206 : vector<16x128xf32> to vector<1x16x128xf32>
    tpu.vector_store %arg7[%c1_155, %c0_156, %c0_157], %209 {strides = array<i32>} : memref<2x16x128xf32, #tpu.memory_space<vmem>>, vector<1x16x128xf32>,
    return
  }
}

</mosaic_0001>

<bundles_post_ra>
// kernel: double_conv_nhwc.1
= control target key start
LH: loop header
LB: loop body
LE: loop exit
PB: predicated region body
PF: predicated region fallthrough
CT: control target
= control target key end

     0   :  { %vm26_vm0 = vcmask 516096   ;;  %vm31_vm1 = vcmask 523264   ;;  %v3025_v3 = vmov 0.0   ;;  %v594_v50 = vlaneseq  ;;  %s3029_s12 = smov 24   ;;  %s3032_s13 = smov 32   ;;  %s3731_s1 = inlined_call_operand.vmem [shape: f32[3,64,128], index: 1, kind: input, shape index: {}]   ;;  %s3732_s0 = inlined_call_operand.vmem [shape: f32[2,16,64], index: 0, kind: input, shape index: {}]   ;;  %s3733_s2 = inlined_call_operand.vmem [shape: f32[1,8], index: 2, kind: input, shape index: {}]   ;;  %s3734_s3 = inlined_call_operand.vmem [shape: f32[1,8], index: 3, kind: input, shape index: {}]   ;;  %s3735_s4 = inlined_call_operand.vmem [shape: f32[3,128,128], index: 4, kind: input, shape index: {}]   ;;  %s3736_s5 = inlined_call_operand.vmem [shape: f32[1,8], index: 5, kind: input, shape index: {}]   ;;  %s3737_s6 = inlined_call_operand.vmem [shape: f32[1,8], index: 6, kind: input, shape index: {}]   ;;  %s3738_s7 = inlined_call_operand.vmem [shape: f32[2,16,128], index: 7, kind: output, shape index: {}]  }
   0x1   :  { %v1775_v0 = vld [vmem:[%s3731_s1 + $0x40] sm:$0xff]  ;;  %v1776_v1 = vld [vmem:[%s3731_s1 + $0x48] sm:$0xff]  ;;  %v1777_v2 = vld [vmem:[%s3731_s1 + $0x50] sm:$0xff]  ;;  %27 = vst.msk [vmem:[#allocation2] sm:$0x1] %vm26_vm0, %v3025_v3  ;;  %v3026_v56 = vmov 0.0|0.0  }
   0x2   :  { %28 = vst.msk [vmem:[#allocation2 + $0x11] sm:$0x1] %vm26_vm0, %v3025_v3  ;;  %35 = vst.msk [vmem:[#allocation2 + $0x18] sm:$0x1] %vm26_vm0, %v3025_v3  ;;  %v2602_v4 = vpack.c.bf16 %v1776_v1, %v1775_v0  ;;  %v1778_v5 = vld [vmem:[%s3731_s1 + $0x58] sm:$0xff]  ;;  %v1779_v7 = vld [vmem:[%s3731_s1 + $0x60] sm:$0xff] }
   0x3   :  { %36 = vst.msk [vmem:[#allocation2 + $0x29] sm:$0x1] %vm26_vm0, %v3025_v3  ;;  %915 = vst [vmem:[#allocation3] sm:$0x1] %v3025_v3  ;;  %v2606_v6 = vpack.c.bf16 %v1778_v5, %v1777_v2  ;;  %v1780_v8 = vld [vmem:[%s3731_s1 + $0x68] sm:$0xff]  ;;  %v29_v9 = vld [vmem:[%s3732_s0] sm:$0xff] }
   0x4   :  { %916 = vst [vmem:[#allocation3 + $0x11] sm:$0x1] %v3025_v3  ;;  %920 = vst [vmem:[#allocation3 + $0x18] sm:$0x1] %v3025_v3  ;;  %2603 = vmatprep.subr.bf16.mxu0 %v2602_v4  ;;  %2651 = vmatprep.subr.bf16.mxu1 %v2602_v4  ;;  %v1773_v10 = vld [vmem:[%s3732_s0 + $0x10] sm:$0xff]  ;;  %v30_v11 = vld [vmem:[%s3732_s0 + $0x8] sm:$0xff]  ;;  %v2610_v13 = vpack.c.bf16 %v1780_v8, %v1779_v7 }
   0x5   :  { %921 = vst [vmem:[#allocation3 + $0x29] sm:$0x1] %v3025_v3  ;;  %32 = vst.msk [vmem:[#allocation2 + $0x1] sm:$0xff] %vm31_vm1, %v29_v9  ;;  %2605 = vmatpush3.bf16.msra.mxu0 %v2602_v4  ;;  %2653 = vmatpush3.bf16.msra.mxu1 %v2602_v4  ;;  %v1774_v12 = vld [vmem:[%s3732_s0 + $0x18] sm:$0xff]  ;;  %v1781_v14 = vld [vmem:[%s3731_s1 + $0x70] sm:$0xff]  ;;  %v3190_v52 = vshrl.u32 %v594_v50, 7 }
   0x6   :  { %40 = vst.msk [vmem:[#allocation2 + $0x19] sm:$0xff] %vm31_vm1, %v1773_v10  ;;  %2607 = vmatprep.subr.bf16.mxu0 %v2606_v6  ;;  %2655 = vmatprep.subr.bf16.mxu1 %v2606_v6  ;;  %33 = vst.msk [vmem:[#allocation2 + $0x9] sm:$0xff] %vm31_vm1, %v30_v11  ;;  %v1782_v15 = vld [vmem:[%s3731_s1 + $0x78] sm:$0xff]  ;;  %v44_v18 = vld [vmem:[%s3731_s1] sm:$0xff]  ;;  %v597_v53 = vand.u32 127, %v594_v50  ;;  %vm3028_vm4 = vmmov 0  }
   0x7   :  { %41 = vst.msk [vmem:[#allocation2 + $0x21] sm:$0xff] %vm31_vm1, %v1774_v12  ;;  %v2614_v16 = vpack.c.bf16 %v1782_v15, %v1781_v14  ;;  %v45_v19 = vld [vmem:[%s3731_s1 + $0x8] sm:$0xff]  ;;  %v46_v22 = vld [vmem:[%s3731_s1 + $0x10] sm:$0xff]  ;;  %v47_v23 = vld [vmem:[%s3731_s1 + $0x18] sm:$0xff]  ;;  %v3027_v58 = vmov 1.0|1.0  }
   0x8   :  { %v2618_v21 = vpack.c.bf16 %v45_v19, %v44_v18  ;;  %v2622_v26 = vpack.c.bf16 %v47_v23, %v46_v22  ;;  %v48_v27 = vld [vmem:[%s3731_s1 + $0x20] sm:$0xff]  ;;  %v49_v28 = vld [vmem:[%s3731_s1 + $0x28] sm:$0xff]  ;;  %v50_v32 = vld [vmem:[%s3731_s1 + $0x30] sm:$0xff]  ;;  %vm598_vm2 = vcmp.eq.s32.totalorder %v3190_v52, %v597_v53  ;;  %s3033_s14 = smov 40   ;;  %s3034_s15 = smov 48   ;;  %vm801_vm5 = vcmask 64512  }
   0x9   :  { %2609 = vmatpush3.bf16.msra.mxu0 %v2606_v6  ;;  %2657 = vmatpush3.bf16.msra.mxu1 %v2606_v6  ;;  %v2626_v31 = vpack.c.bf16 %v49_v28, %v48_v27  ;;  %v51_v33 = vld [vmem:[%s3731_s1 + $0x38] sm:$0xff]  ;;  %v1787_v35 = vld [vmem:[%s3731_s1 + $0x80] sm:$0xff]  ;;  %v1788_v36 = vld [vmem:[%s3731_s1 + $0x88] sm:$0xff]  ;;  %s3035_s20 = smov 56   ;;  %s3036_s0 = smov 64   ;;  %vm803_vm6 = vcmask 130048  }
   0xa   :  { %2611 = vmatprep.subr.bf16.mxu0 %v2610_v13  ;;  %2659 = vmatprep.subr.bf16.mxu1 %v2610_v13  ;;  %v2630_v34 = vpack.c.bf16 %v51_v33, %v50_v32  ;;  %v2634_v37 = vpack.c.bf16 %v1788_v36, %v1787_v35  ;;  %v1789_v38 = vld [vmem:[%s3731_s1 + $0x90] sm:$0xff]  ;;  %v1790_v39 = vld [vmem:[%s3731_s1 + $0x98] sm:$0xff]  ;;  %v1791_v43 = vld [vmem:[%s3731_s1 + $0xa0] sm:$0xff]  ;;  %v3291_v33 = vsub.s32 0, %v3190_v52  ;;  %s3037_s29 = smov 72   ;;  %s3038_s10 = smov 80  }
   0xb   :  { %v2638_v42 = vpack.c.bf16 %v1790_v39, %v1789_v38  ;;  %v1792_v44 = vld [vmem:[%s3731_s1 + $0xa8] sm:$0xff]  ;;  %v1793_v48 = vld [vmem:[%s3731_s1 + $0xb0] sm:$0xff]  ;;  %v1794_v49 = vld [vmem:[%s3731_s1 + $0xb8] sm:$0xff]  ;;  %s3039_s19 = smov 88   ;;  %s3040_s25 = smov 96   ;;  %vm805_vm7 = vcmask 195584  }
   0xc   :  { %v52_v17 = vld [vmem:[#allocation2 + $0x1] sm:$0xff]  ;;  %v2642_v47 = vpack.c.bf16 %v1792_v44, %v1791_v43  ;;  %v2646_v51 = vpack.c.bf16 %v1794_v49, %v1793_v48  ;;  %vm3194_vm3 = vmpackc.low %vm598_vm2, %vm598_vm2  ;;  %v570_v32 = vld [vmem:[%s3733_s2] sm:$0x1]  ;;  %s3030_s2 = smov 8   ;;  %s3041_s8 = smov 104   ;;  %vm3739_vm8 = vcmask 261120  }
   0xd   :  { %2154 = vmatprep.mubr.msk.f32.mxu0 %vm31_vm1, %v52_v17  ;;  %v321_v20 = vld [vmem:[#allocation2 + $0x19] sm:$0xff]  ;;  %2613 = vmatpush3.bf16.msra.mxu0 %v2610_v13  ;;  %v53_v24 = vld [vmem:[#allocation2 + $0x9] sm:$0xff]  ;;  %s3042_s17 = smov 112   ;;  %s3043_s24 = smov 120   ;;  %vm809_vm9 = vcmask 326656   ;;  %vm811_vm10 = vcmask 392192  }
   0xe   :  { %2661 = vmatpush3.bf16.msra.mxu1 %v2610_v13  ;;  %2615 = vmatprep.subr.bf16.mxu0 %v2614_v16  ;;  %v322_v25 = vld [vmem:[#allocation2 + $0x21] sm:$0xff]  ;;  %v319_v30 = vld [vmem:[#allocation2 + $0x18] sm:$0xff]  ;;  %v226_v54 = vld [vmem:[#allocation2 + $0xa] sm:$0xff]  ;;  %vm813_vm11 = vcmask 457728   ;;  %vm816_vm12 = vcmask 588800   ;;  %vm818_vm13 = vcmask 654336  }
   0xf   :  { %2663 = vmatprep.subr.bf16.mxu1 %v2614_v16  ;;  %2211 = vmatprep.mubr.msk.f32.mxu1 %vm31_vm1, %v321_v20  ;;  %v42_v29 = vld [vmem:[#allocation2] sm:$0xff]  ;;  %v43_v40 = vld [vmem:[#allocation2 + $0x8] sm:$0xff]  ;;  %v1838_v44 = vld [vmem:[%s3735_s4 + $0x90] sm:$0xff]  ;;  %vm820_vm14 = vcmask 719872   ;;  %vm822_vm15 = vcmask 785408   ;;  %vm824_vm0 = vcmask 850944  }
  0x10   :  { %v320_v41 = vld [vmem:[#allocation2 + $0x20] sm:$0xff]  ;;  %v1841_v48 = vld [vmem:[%s3735_s4 + $0xa8] sm:$0xff]  ;;  %v1842_v50 = vld [vmem:[%s3735_s4 + $0xb0] sm:$0xff]  ;;  %vm826_vm2 = vcmask 916480  }
  0x11   :  { %2617 = vmatpush3.bf16.msra.mxu0 %v2614_v16  ;;  %v225_v45 = vld [vmem:[#allocation2 + $0x2] sm:$0xff]  ;;  %v485_v46 = vld [vmem:[#allocation2 + $0x1a] sm:$0xff] }
  0x12   :  { %2665 = vmatpush3.bf16.msra.mxu1 %v2614_v16  ;;  %2619 = vmatprep.subr.bf16.mxu0 %v2618_v21  ;;  %v486_v55 = vld [vmem:[#allocation2 + $0x22] sm:$0xff]  ;;  %v571_v36 = vld [vmem:[%s3734_s3] sm:$0x1]  ;;  %s3031_s3 = smov 16  }
  0x13   :  { %2667 = vmatprep.subr.bf16.mxu1 %v2618_v21  ;;  %v1844_v53 = vld [vmem:[%s3735_s4 + $0xc0] sm:$0xff] }
  0x14   :  { %2155 = vmatmul.mubr.msk.f32.vlgmr.msra.gmra.mrb[0].mxu0 %vm31_vm1, %v53_v24 }
  0x15   :  { %2212 = vmatmul.mubr.msk.f32.vlgmr.msra.gmra.mrb[0].mxu1 %vm31_vm1, %v322_v25  ;;  %2621 = vmatpush3.bf16.msra.mxu0 %v2618_v21 }
  0x16   :  { %2669 = vmatpush3.bf16.msra.mxu1 %v2618_v21  ;;  %2623 = vmatprep.subr.bf16.mxu0 %v2622_v26 }
  0x17   :  { %2671 = vmatprep.subr.bf16.mxu1 %v2622_v26  ;;  %2173 = vmatprep.mubr.msk.f32.mxu0 %vm31_vm1, %v42_v29 }
  0x18   :  { %2230 = vmatprep.mubr.msk.f32.mxu1 %vm31_vm1, %v319_v30 }
  0x19   :  { %2625 = vmatpush3.bf16.msra.mxu0 %v2622_v26 }
  0x1a   :  { %2673 = vmatpush3.bf16.msra.mxu1 %v2622_v26  ;;  %2627 = vmatprep.subr.bf16.mxu0 %v2626_v31 }
  0x1b   :  { %2675 = vmatprep.subr.bf16.mxu1 %v2626_v31 }
  0x1d   :  { %2629 = vmatpush3.bf16.msra.mxu0 %v2626_v31 }
  0x1e   :  { %2677 = vmatpush3.bf16.msra.mxu1 %v2626_v31  ;;  %2631 = vmatprep.subr.bf16.mxu0 %v2630_v34 }
  0x1f   :  { %2679 = vmatprep.subr.bf16.mxu1 %v2630_v34 }
  0x21   :  { %2633 = vmatpush3.bf16.msra.mxu0 %v2630_v34 }
  0x22   :  { %2681 = vmatpush3.bf16.msra.mxu1 %v2630_v34  ;;  %2635 = vmatprep.subr.bf16.mxu0 %v2634_v37 }
  0x23   :  { %2683 = vmatprep.subr.bf16.mxu1 %v2634_v37 }
  0x24   :  { %2174 = vmatmul.mubr.msk.f32.vlgmr.msra.gmra.mrb[0].mxu0 %vm31_vm1, %v43_v40 }
  0x25   :  { %2231 = vmatmul.mubr.msk.f32.vlgmr.msra.gmra.mrb[0].mxu1 %vm31_vm1, %v320_v41  ;;  %2637 = vmatpush3.bf16.msra.mxu0 %v2634_v37  ;;  %v1836_v41 = vld [vmem:[%s3735_s4 + $0x80] sm:$0xff] }
  0x26   :  { %2685 = vmatpush3.bf16.msra.mxu1 %v2634_v37  ;;  %2639 = vmatprep.subr.bf16.mxu0 %v2638_v42 }
  0x27   :  { %2687 = vmatprep.subr.bf16.mxu1 %v2638_v42  ;;  %2192 = vmatprep.mubr.msk.f32.mxu0 %vm31_vm1, %v225_v45  ;;  %v1839_v45 = vld [vmem:[%s3735_s4 + $0x98] sm:$0xff] }
  0x28   :  { %2249 = vmatprep.mubr.msk.f32.mxu1 %vm31_vm1, %v485_v46  ;;  %v2750_v46 = vpack.c.bf16 %v1839_v45, %v1838_v44 }
  0x29   :  { %2641 = vmatpush3.bf16.msra.mxu0 %v2638_v42 }
  0x2a   :  { %2689 = vmatpush3.bf16.msra.mxu1 %v2638_v42  ;;  %2643 = vmatprep.subr.bf16.mxu0 %v2642_v47  ;;  %v1837_v42 = vld [vmem:[%s3735_s4 + $0x88] sm:$0xff] }
  0x2b   :  { %2691 = vmatprep.subr.bf16.mxu1 %v2642_v47  ;;  %v2746_v43 = vpack.c.bf16 %v1837_v42, %v1836_v41 }
  0x2d   :  { %2645 = vmatpush3.bf16.msra.mxu0 %v2642_v47 }
  0x2e   :  { %2693 = vmatpush3.bf16.msra.mxu1 %v2642_v47  ;;  %2647 = vmatprep.subr.bf16.mxu0 %v2646_v51  ;;  %v1840_v47 = vld [vmem:[%s3735_s4 + $0xa0] sm:$0xff] }
  0x2f   :  { %2695 = vmatprep.subr.bf16.mxu1 %v2646_v51  ;;  %v2754_v49 = vpack.c.bf16 %v1841_v48, %v1840_v47 }
  0x31   :  { %2649 = vmatpush3.bf16.msra.mxu0 %v2646_v51 }
  0x32   :  { %2697 = vmatpush3.bf16.msra.mxu1 %v2646_v51  ;;  %2698 = vmatprep.subr.bf16.mxu0 %v3026_v56  ;;  %v1843_v51 = vld [vmem:[%s3735_s4 + $0xb8] sm:$0xff] }
  0x33   :  { %2722 = vmatprep.subr.bf16.mxu1 %v3026_v56  ;;  %v2758_v52 = vpack.c.bf16 %v1843_v51, %v1842_v50 }
  0x34   :  { %2193 = vmatmul.mubr.msk.f32.vlgmr.msra.gmra.mrb[0].mxu0 %vm31_vm1, %v226_v54  ;;  %v1845_v54 = vld [vmem:[%s3735_s4 + $0xc8] sm:$0xff] }
  0x35   :  { %2250 = vmatmul.mubr.msk.f32.vlgmr.msra.gmra.mrb[0].mxu1 %vm31_vm1, %v486_v55  ;;  %2700 = vmatpush3.bf16.msk.msra.mxu0 %vm3194_vm3, %v3027_v58  ;;  %v2762_v55 = vpack.c.bf16 %v1845_v54, %v1844_v53 }
  0x36   :  { %2724 = vmatpush3.bf16.msk.msra.mxu1 %vm3194_vm3, %v3027_v58  ;;  %2701 = vmatprep.subr.bf16.mxu0 %v3026_v56 }
  0x37   :  { %2725 = vmatprep.subr.bf16.mxu1 %v3026_v56  ;;  %2284 = vmatprep.mubr.msk.f32.mxu0 %vm3028_vm4, %v3025_v3 }
  0x38   :  { %2319 = vmatprep.mubr.msk.f32.mxu1 %vm3028_vm4, %v3025_v3 }
  0x39   :  { %2703 = vmatpush3.bf16.msk.msra.mxu0 %vm3194_vm3, %v3027_v58 }
  0x3a   :  { %2727 = vmatpush3.bf16.msk.msra.mxu1 %vm3194_vm3, %v3027_v58  ;;  %2704 = vmatprep.subr.bf16.mxu0 %v3026_v56 }
  0x3b   :  { %2728 = vmatprep.subr.bf16.mxu1 %v3026_v56 }
  0x3d   :  { %2706 = vmatpush3.bf16.msk.msra.mxu0 %vm3194_vm3, %v3027_v58 }
  0x3e   :  { %2730 = vmatpush3.bf16.msk.msra.mxu1 %vm3194_vm3, %v3027_v58  ;;  %2707 = vmatprep.subr.bf16.mxu0 %v3026_v56 }
  0x3f   :  { %2731 = vmatprep.subr.bf16.mxu1 %v3026_v56 }
  0x41   :  { %2709 = vmatpush3.bf16.msk.msra.mxu0 %vm3194_vm3, %v3027_v58 }
  0x42   :  { %2733 = vmatpush3.bf16.msk.msra.mxu1 %vm3194_vm3, %v3027_v58  ;;  %2710 = vmatprep.subr.bf16.mxu0 %v3026_v56 }
  0x43   :  { %2734 = vmatprep.subr.bf16.mxu1 %v3026_v56 }
  0x45   :  { %2712 = vmatpush3.bf16.msk.msra.mxu0 %vm3194_vm3, %v3027_v58 }
  0x46   :  { %2736 = vmatpush3.bf16.msk.msra.mxu1 %vm3194_vm3, %v3027_v58  ;;  %2713 = vmatprep.subr.bf16.mxu0 %v3026_v56 }
  0x47   :  { %2737 = vmatprep.subr.bf16.mxu1 %v3026_v56 }
  0x49   :  { %2715 = vmatpush3.bf16.msk.msra.mxu0 %vm3194_vm3, %v3027_v58 }
  0x4a   :  { %2739 = vmatpush3.bf16.msk.msra.mxu1 %vm3194_vm3, %v3027_v58  ;;  %2716 = vmatprep.subr.bf16.mxu0 %v3026_v56 }
  0x4b   :  { %2740 = vmatprep.subr.bf16.mxu1 %v3026_v56 }
  0x4d   :  { %2718 = vmatpush3.bf16.msk.msra.mxu0 %vm3194_vm3, %v3027_v58 }
  0x4e   :  { %2742 = vmatpush3.bf16.msk.msra.mxu1 %vm3194_vm3, %v3027_v58  ;;  %2719 = vmatprep.subr.bf16.mxu0 %v3026_v56 }
  0x4f   :  { %2743 = vmatprep.subr.bf16.mxu1 %v3026_v56 }
  0x51   :  { %2721 = vmatpush3.bf16.msk.msra.mxu0 %vm3194_vm3, %v3027_v58 }
  0x52   :  { %2745 = vmatpush3.bf16.msk.msra.mxu1 %vm3194_vm3, %v3027_v58  ;;  %2747 = vmatprep.subr.bf16.mxu0 %v2746_v43 }
  0x53   :  { %2843 = vmatprep.subr.bf16.mxu1 %v2746_v43 }
 0x107   :  { %v3267_v59 = vpop.f32.mrb[0].mxu0 }
 0x108   :  { %v3269_v60 = vpop.f32.mrb[0].mxu1  ;;  %v573_v61 = vmul.f32 %v3267_v59, %v3267_v59  ;;  %v3273_v62 = vpop.f32.mrb[1].mxu0 }
 0x109   :  { %v3275_v63 = vpop.f32.mrb[1].mxu1  ;;  %v572_v0 = vmul.f32 %v3273_v62, %v3273_v62  ;;  %v576_v1 = vadd.f32 %v3267_v59, %v3273_v62  ;;  %v575_v6 = vmul.f32 %v3269_v60, %v3269_v60 }
 0x10a   :  { %v574_v4 = vmul.f32 %v3275_v63, %v3275_v63 }
 0x10b   :  { %v585_v2 = vadd.f32 %v573_v61, %v572_v0  ;;  %v577_v5 = vadd.f32 %v576_v1, %v3275_v63  ;;  %v1846_v61 = vld [vmem:[%s3735_s4 + $0xd0] sm:$0xff]  ;;  %v1847_v0 = vld [vmem:[%s3735_s4 + $0xd8] sm:$0xff] }
 0x10c   :  { %v2766_v1 = vpack.c.bf16 %v1847_v0, %v1846_v61 }
 0x10d   :  { %v578_v7 = vadd.f32 %v3269_v60, %v577_v5  ;;  %v586_v8 = vadd.f32 %v585_v2, %v574_v4  ;;  %v1848_v2 = vld [vmem:[%s3735_s4 + $0xe0] sm:$0xff]  ;;  %v1849_v4 = vld [vmem:[%s3735_s4 + $0xe8] sm:$0xff] }
 0x10e   :  { %v2770_v5 = vpack.c.bf16 %v1849_v4, %v1848_v2 }
 0x10f   :  { %v579_v9 = vrot.slane %v578_v7, 4  ;;  %v587_v10 = vadd.f32 %v586_v8, %v575_v6  ;;  %v1850_v6 = vld [vmem:[%s3735_s4 + $0xf0] sm:$0xff] }
 0x111   :  { %v580_v11 = vadd.f32 %v579_v9, %v578_v7  ;;  %v588_v12 = vrot.slane %v587_v10, 4  ;;  %v1851_v7 = vld [vmem:[%s3735_s4 + $0xf8] sm:$0xff]  ;;  %v926_v9 = vld [vmem:[%s3735_s4] sm:$0xff] }
 0x112   :  { %v2774_v8 = vpack.c.bf16 %v1851_v7, %v1850_v6 }
 0x113   :  { %v581_v13 = vrot.slane %v580_v11, 2  ;;  %v589_v14 = vadd.f32 %v588_v12, %v587_v10  ;;  %v927_v10 = vld [vmem:[%s3735_s4 + $0x8] sm:$0xff] }
 0x115   :  { %v582_v15 = vadd.f32 %v581_v13, %v580_v11  ;;  %v590_v16 = vrot.slane %v589_v14, 2  ;;  %v3415_v11 = vpack.c.bf16 %v927_v10, %v926_v9 }
 0x117   :  { %v583_v17 = vrot.slane %v582_v15, 1  ;;  %v591_v18 = vadd.f32 %v590_v16, %v589_v14 }
 0x119   :  { %v584_v19 = vadd.f32 %v583_v17, %v582_v15  ;;  %v592_v20 = vrot.slane %v591_v18, 1 }
 0x11b   :  { %2285 = vmatmul.mubr.f32.vlgmr.msra.gmra.mrb[2].mxu0 %v584_v19  ;;  %v593_v21 = vadd.f32 %v592_v20, %v591_v18 }
 0x11c   :  { %2749 = vmatpush3.bf16.msra.mxu0 %v2746_v43 }
 0x11d   :  { %2320 = vmatmul.mubr.f32.vlgmr.msra.gmra.mrb[2].mxu1 %v593_v21  ;;  %2751 = vmatprep.subr.bf16.mxu0 %v2750_v46 }
 0x11e   :  { %2845 = vmatpush3.bf16.msra.mxu1 %v2746_v43 }
 0x11f   :  { %2847 = vmatprep.subr.bf16.mxu1 %v2750_v46 }
 0x120   :  { %2753 = vmatpush3.bf16.msra.mxu0 %v2750_v46 }
 0x121   :  { %2755 = vmatprep.subr.bf16.mxu0 %v2754_v49 }
 0x122   :  { %2849 = vmatpush3.bf16.msra.mxu1 %v2750_v46 }
 0x123   :  { %2851 = vmatprep.subr.bf16.mxu1 %v2754_v49 }
 0x124   :  { %2757 = vmatpush3.bf16.msra.mxu0 %v2754_v49 }
 0x125   :  { %2759 = vmatprep.subr.bf16.mxu0 %v2758_v52 }
 0x126   :  { %2853 = vmatpush3.bf16.msra.mxu1 %v2754_v49 }
 0x127   :  { %2855 = vmatprep.subr.bf16.mxu1 %v2758_v52 }
 0x128   :  { %2761 = vmatpush3.bf16.msra.mxu0 %v2758_v52 }
 0x129   :  { %2763 = vmatprep.subr.bf16.mxu0 %v2762_v55 }
 0x12a   :  { %2857 = vmatpush3.bf16.msra.mxu1 %v2758_v52 }
 0x12b   :  { %2859 = vmatprep.subr.bf16.mxu1 %v2762_v55 }
 0x12c   :  { %2765 = vmatpush3.bf16.msra.mxu0 %v2762_v55 }
 0x12d   :  { %2767 = vmatprep.subr.bf16.mxu0 %v2766_v1 }
 0x12e   :  { %2861 = vmatpush3.bf16.msra.mxu1 %v2762_v55 }
 0x12f   :  { %2863 = vmatprep.subr.bf16.mxu1 %v2766_v1 }
 0x130   :  { %2769 = vmatpush3.bf16.msra.mxu0 %v2766_v1 }
 0x131   :  { %2771 = vmatprep.subr.bf16.mxu0 %v2770_v5 }
 0x132   :  { %2865 = vmatpush3.bf16.msra.mxu1 %v2766_v1 }
 0x133   :  { %2867 = vmatprep.subr.bf16.mxu1 %v2770_v5 }
 0x134   :  { %2773 = vmatpush3.bf16.msra.mxu0 %v2770_v5 }
 0x135   :  { %2775 = vmatprep.subr.bf16.mxu0 %v2774_v8 }
 0x136   :  { %2869 = vmatpush3.bf16.msra.mxu1 %v2770_v5 }
 0x137   :  { %2871 = vmatprep.subr.bf16.mxu1 %v2774_v8 }
 0x138   :  { %2777 = vmatpush3.bf16.msra.mxu0 %v2774_v8 }
 0x139   :  { %2779 = vmatprep.subr.bf16.mxu0 %v3415_v11 }
 0x13a   :  { %2873 = vmatpush3.bf16.msra.mxu1 %v2774_v8 }
 0x13b   :  { %2875 = vmatprep.subr.bf16.mxu1 %v3415_v11 }
 0x1ee   :  { %v667_v22 = vpop.f32.mrb[2].mxu0 }
 0x1ef   :  { %v741_v23 = vmul.f32 0.001953125, %v667_v22  ;;  %v2286_v24 = vpop.f32.mrb[3].mxu0 }
 0x1f0   :  { %v737_v25 = vpop.f32.mrb[2].mxu1 }
 0x1f1   :  { %v743_v26 = vmul.f32 %v741_v23, %v741_v23  ;;  %v742_v27 = vmul.f32 0.001953125, %v737_v25  ;;  %v2321_v28 = vpop.f32.mrb[3].mxu1 }
 0x1f3   :  { %v744_v29 = vsub.f32 %v742_v27, %v743_v26 }
 0x1f5   :  { %v745_v30 = vmax.f32 %v744_v29, 0.0 }
 0x1f7   :  { %v746_v31 = vadd.f32 1e-05, %v745_v30 }
 0x1f9   :  { %3021 = vrsqrt.f32 %v746_v31 }
 0x203   :  { %v3022_v34 = vpop.eup %3021 }
 0x204   :  { %v3293_v35 = vmul.f32 %v3022_v34, %v570_v32 }
 0x206   :  { %v749_v37 = vmul.f32 %v3293_v35, %v741_v23  ;;  %v3301_v38 = vrot.slane %v3293_v35, %v3291_v33 }
 0x208   :  { %v3303_v39 = vsub.f32 %v571_v36, %v749_v37  ;;  %762 = vrot.lane.b32.xlu1 %v3301_v38, %s3029_s12  ;;  %756 = vrot.lane.b32.xlu0 %v3301_v38, %s3030_s2 }
 0x20a   :  { %v3311_v40 = vrot.slane %v3303_v39, %v3291_v33 }
 0x20c   :  { %759 = vrot.lane.b32.xlu0 %v3301_v38, %s3031_s3  ;;  %835 = vrot.lane.b32.xlu1 %v3311_v40, %s3030_s2 }
 0x210   :  { %765 = vrot.lane.b32.xlu0 %v3301_v38, %s3032_s13  ;;  %838 = vrot.lane.b32.xlu1 %v3311_v40, %s3031_s3 }
 0x214   :  { %768 = vrot.lane.b32.xlu0 %v3301_v38, %s3033_s14  ;;  %841 = vrot.lane.b32.xlu1 %v3311_v40, %s3029_s12 }
 0x218   :  { %771 = vrot.lane.b32.xlu0 %v3301_v38, %s3034_s15  ;;  %844 = vrot.lane.b32.xlu1 %v3311_v40, %s3032_s13 }
 0x21c   :  { %774 = vrot.lane.b32.xlu0 %v3301_v38, %s3035_s20  ;;  %847 = vrot.lane.b32.xlu1 %v3311_v40, %s3033_s14 }
 0x220   :  { %777 = vrot.lane.b32.xlu0 %v3301_v38, %s3036_s0  ;;  %850 = vrot.lane.b32.xlu1 %v3311_v40, %s3034_s15 }
 0x224   :  { %780 = vrot.lane.b32.xlu0 %v3301_v38, %s3037_s29  ;;  %853 = vrot.lane.b32.xlu1 %v3311_v40, %s3035_s20 }
 0x228   :  { %783 = vrot.lane.b32.xlu0 %v3301_v38, %s3038_s10  ;;  %856 = vrot.lane.b32.xlu1 %v3311_v40, %s3036_s0 }
 0x22c   :  { %786 = vrot.lane.b32.xlu0 %v3301_v38, %s3039_s19  ;;  %859 = vrot.lane.b32.xlu1 %v3311_v40, %s3037_s29 }
 0x230   :  { %789 = vrot.lane.b32.xlu0 %v3301_v38, %s3040_s25  ;;  %862 = vrot.lane.b32.xlu1 %v3311_v40, %s3038_s10 }
 0x234   :  { %792 = vrot.lane.b32.xlu0 %v3301_v38, %s3041_s8  ;;  %865 = vrot.lane.b32.xlu1 %v3311_v40, %s3039_s19 }
 0x238   :  { %795 = vrot.lane.b32.xlu0 %v3301_v38, %s3042_s17  ;;  %868 = vrot.lane.b32.xlu1 %v3311_v40, %s3040_s25 }
 0x23c   :  { %798 = vrot.lane.b32.xlu0 %v3301_v38, %s3043_s24  ;;  %871 = vrot.lane.b32.xlu1 %v3311_v40, %s3041_s8 }
 0x240   :  { %874 = vrot.lane.b32.xlu0 %v3311_v40, %s3042_s17  ;;  %877 = vrot.lane.b32.xlu1 %v3311_v40, %s3043_s24 }
 0x27a   :  { %v763_v12 = vpop.permute.xlu1 %762  ;;  %v757_v13 = vpop.permute.xlu0 %756 }
 0x27b   :  { %v802_v32 = vsel %vm801_vm5, %v3293_v35, %v757_v13 }
 0x27e   :  { %v760_v14 = vpop.permute.xlu0 %759  ;;  %v836_v15 = vpop.permute.xlu1 %835 }
 0x27f   :  { %v804_v34 = vsel %vm803_vm6, %v802_v32, %v760_v14  ;;  %v880_v42 = vsel %vm801_vm5, %v3303_v39, %v836_v15  ;;  %v931_v32 = vld [vmem:[%s3735_s4 + $0x28] sm:$0xff] }
 0x280   :  { %v806_v38 = vsel %vm805_vm7, %v804_v34, %v763_v12 }
 0x282   :  { %v766_v16 = vpop.permute.xlu0 %765  ;;  %v839_v17 = vpop.permute.xlu1 %838 }
 0x283   :  { %v808_v40 = vsel %vm3739_vm8, %v806_v38, %v766_v16  ;;  %v881_v45 = vsel %vm803_vm6, %v880_v42, %v839_v17  ;;  %v935_v42 = vld [vmem:[%s3735_s4 + $0x48] sm:$0xff] }
 0x286   :  { %v769_v18 = vpop.permute.xlu0 %768  ;;  %v842_v19 = vpop.permute.xlu1 %841 }
 0x287   :  { %v810_v41 = vsel %vm809_vm9, %v808_v40, %v769_v18  ;;  %v882_v47 = vsel %vm805_vm7, %v881_v45, %v842_v19 }
 0x28a   :  { %v772_v20 = vpop.permute.xlu0 %771  ;;  %v845_v21 = vpop.permute.xlu1 %844 }
 0x28b   :  { %v812_v35 = vsel %vm811_vm10, %v810_v41, %v772_v20  ;;  %v883_v49 = vsel %vm3739_vm8, %v882_v47, %v845_v21  ;;  %vm828_vm8 = vcmask 982016   ;;  %v939_v47 = vld [vmem:[%s3735_s4 + $0x68] sm:$0xff] }
 0x28e   :  { %v775_v22 = vpop.permute.xlu0 %774  ;;  %v848_v23 = vpop.permute.xlu1 %847 }
 0x28f   :  { %v814_v46 = vsel %vm813_vm11, %v812_v35, %v775_v22  ;;  %v884_v39 = vsel %vm809_vm9, %v883_v49, %v848_v23  ;;  %v940_v49 = vld [vmem:[%s3735_s4 + $0x70] sm:$0xff] }
 0x292   :  { %v778_v24 = vpop.permute.xlu0 %777  ;;  %v851_v25 = vpop.permute.xlu1 %850 }
 0x293   :  { %v815_v48 = vsel %vm31_vm1, %v814_v46, %v778_v24  ;;  %v885_v54 = vsel %vm811_vm10, %v884_v39, %v851_v25  ;;  %v938_v46 = vld [vmem:[%s3735_s4 + $0x60] sm:$0xff] }
 0x296   :  { %v781_v26 = vpop.permute.xlu0 %780  ;;  %v854_v27 = vpop.permute.xlu1 %853 }
 0x297   :  { %v817_v50 = vsel %vm816_vm12, %v815_v48, %v781_v26  ;;  %v886_v61 = vsel %vm813_vm11, %v885_v54, %v854_v27  ;;  %v2802_v48 = vpack.c.bf16 %v939_v47, %v938_v46  ;;  %v1854_v54 = vld [vmem:[%s3735_s4 + $0x110] sm:$0xff] }
 0x29a   :  { %v784_v28 = vpop.permute.xlu0 %783  ;;  %v857_v29 = vpop.permute.xlu1 %856 }
 0x29b   :  { %v819_v51 = vsel %vm818_vm13, %v817_v50, %v784_v28  ;;  %v887_v1 = vsel %vm31_vm1, %v886_v61, %v857_v29  ;;  %v928_v28 = vld [vmem:[%s3735_s4 + $0x10] sm:$0xff]  ;;  %v941_v50 = vld [vmem:[%s3735_s4 + $0x78] sm:$0xff]  ;;  %v1856_v61 = vld [vmem:[%s3735_s4 + $0x120] sm:$0xff] }
 0x29c   :  { %v2806_v39 = vpack.c.bf16 %v941_v50, %v940_v49 }
 0x29e   :  { %v787_v30 = vpop.permute.xlu0 %786  ;;  %v860_v31 = vpop.permute.xlu1 %859 }
 0x29f   :  { %v821_v55 = vsel %vm820_vm14, %v819_v51, %v787_v30  ;;  %v888_v4 = vsel %vm816_vm12, %v887_v1, %v860_v31  ;;  %v1852_v51 = vld [vmem:[%s3735_s4 + $0x100] sm:$0xff] }
 0x2a2   :  { %v790_v36 = vpop.permute.xlu0 %789  ;;  %v863_v37 = vpop.permute.xlu1 %862 }
 0x2a3   :  { %v823_v0 = vsel %vm822_vm15, %v821_v55, %v790_v36  ;;  %v889_v8 = vsel %vm818_vm13, %v888_v4, %v863_v37  ;;  %v932_v36 = vld [vmem:[%s3735_s4 + $0x30] sm:$0xff]  ;;  %v933_v37 = vld [vmem:[%s3735_s4 + $0x38] sm:$0xff]  ;;  %v1857_v4 = vld [vmem:[%s3735_s4 + $0x128] sm:$0xff] }
 0x2a4   :  { %v2790_v41 = vpack.c.bf16 %v933_v37, %v932_v36  ;;  %v1855_v55 = vld [vmem:[%s3735_s4 + $0x118] sm:$0xff] }
 0x2a6   :  { %v793_v43 = vpop.permute.xlu0 %792  ;;  %v866_v44 = vpop.permute.xlu1 %865 }
 0x2a7   :  { %v825_v2 = vsel %vm824_vm0, %v823_v0, %v793_v43  ;;  %v890_v10 = vsel %vm820_vm14, %v889_v8, %v866_v44  ;;  %v936_v43 = vld [vmem:[%s3735_s4 + $0x50] sm:$0xff]  ;;  %v937_v44 = vld [vmem:[%s3735_s4 + $0x58] sm:$0xff] }
 0x2a8   :  { %v2798_v45 = vpack.c.bf16 %v937_v44, %v936_v43  ;;  %v1858_v8 = vld [vmem:[%s3735_s4 + $0x130] sm:$0xff] }
 0x2aa   :  { %v796_v52 = vpop.permute.xlu0 %795  ;;  %v869_v53 = vpop.permute.xlu1 %868 }
 0x2ab   :  { %v827_v5 = vsel %vm826_vm2, %v825_v2, %v796_v52  ;;  %v891_v13 = vsel %vm822_vm15, %v890_v10, %v869_v53  ;;  %v1853_v52 = vld [vmem:[%s3735_s4 + $0x108] sm:$0xff]  ;;  %v2814_v2 = vpack.c.bf16 %v1855_v55, %v1854_v54  ;;  %v1440_v54 = vld [vmem:[%s3736_s5] sm:$0x1] }
 0x2ac   :  { %v2810_v53 = vpack.c.bf16 %v1853_v52, %v1852_v51 }
 0x2ae   :  { %v799_v6 = vpop.permute.xlu0 %798  ;;  %v872_v7 = vpop.permute.xlu1 %871 }
 0x2af   :  { %v829_v9 = vsel %vm828_vm8, %v827_v5, %v799_v6  ;;  %v892_v14 = vsel %vm824_vm0, %v891_v13, %v872_v7  ;;  %v2818_v7 = vpack.c.bf16 %v1857_v4, %v1856_v61  ;;  %v1861_v13 = vld [vmem:[%s3735_s4 + $0x148] sm:$0xff] }
 0x2b0   :  { %v898_v12 = vrot.slane %v829_v9, %v3291_v33  ;;  %v1859_v9 = vld [vmem:[%s3735_s4 + $0x138] sm:$0xff] }
 0x2b1   :  { %v2822_v10 = vpack.c.bf16 %v1859_v9, %v1858_v8 }
 0x2b2   :  { %v875_v15 = vpop.permute.xlu0 %874  ;;  %v878_v16 = vpop.permute.xlu1 %877  ;;  %v899_v18 = vmul.f32 %v898_v12, %v3273_v62  ;;  %v900_v20 = vmul.f32 %v3267_v59, %v898_v12  ;;  %v901_v21 = vmul.f32 %v898_v12, %v3275_v63  ;;  %v902_v22 = vmul.f32 %v3269_v60, %v898_v12  ;;  %v929_v62 = vld [vmem:[%s3735_s4 + $0x18] sm:$0xff]  ;;  %v930_v60 = vld [vmem:[%s3735_s4 + $0x20] sm:$0xff] }
 0x2b3   :  { %v893_v17 = vsel %vm826_vm2, %v892_v14, %v875_v15  ;;  %v2782_v31 = vpack.c.bf16 %v929_v62, %v928_v28  ;;  %v2786_v34 = vpack.c.bf16 %v931_v32, %v930_v60  ;;  %v1860_v12 = vld [vmem:[%s3735_s4 + $0x140] sm:$0xff]  ;;  %v1862_v15 = vld [vmem:[%s3735_s4 + $0x150] sm:$0xff] }
 0x2b4   :  { %v894_v19 = vsel %vm828_vm8, %v893_v17, %v878_v16  ;;  %v2826_v14 = vpack.c.bf16 %v1861_v13, %v1860_v12  ;;  %v1863_v16 = vld [vmem:[%s3735_s4 + $0x158] sm:$0xff] }
 0x2b5   :  { %v906_v23 = vrot.slane %v894_v19, %v3291_v33  ;;  %v2830_v17 = vpack.c.bf16 %v1863_v16, %v1862_v15  ;;  %v1865_v19 = vld [vmem:[%s3735_s4 + $0x168] sm:$0xff] }
 0x2b7   :  { %v907_v24 = vadd.f32 %v906_v23, %v899_v18  ;;  %v908_v25 = vadd.f32 %v906_v23, %v900_v20  ;;  %v909_v26 = vadd.f32 %v906_v23, %v901_v21  ;;  %v910_v27 = vadd.f32 %v906_v23, %v902_v22  ;;  %v1864_v18 = vld [vmem:[%s3735_s4 + $0x160] sm:$0xff]  ;;  %v1866_v21 = vld [vmem:[%s3735_s4 + $0x170] sm:$0xff]  ;;  %v1867_v22 = vld [vmem:[%s3735_s4 + $0x178] sm:$0xff] }
 0x2b8   :  { %v2834_v20 = vpack.c.bf16 %v1865_v19, %v1864_v18  ;;  %v2838_v23 = vpack.c.bf16 %v1867_v22, %v1866_v21 }
 0x2b9   :  { %v911_v29 = vmax.f32 %v907_v24, 0.0  ;;  %v912_v59 = vmax.f32 %v908_v25, 0.0  ;;  %v913_v30 = vmax.f32 %v909_v26, 0.0  ;;  %v914_v63 = vmax.f32 %v910_v27, 0.0 }
 0x2bb   :  { %917 = vst [vmem:[#allocation3 + $0x1] sm:$0xff] %v911_v29  ;;  %918 = vst [vmem:[#allocation3 + $0x9] sm:$0xff] %v912_v59  ;;  %2354 = vmatprep.mubr.f32.mxu0 %v911_v29  ;;  %2459 = vmatprep.mubr.f32.mxu1 %v913_v30 }
 0x2bc   :  { %922 = vst [vmem:[#allocation3 + $0x19] sm:$0xff] %v913_v30  ;;  %923 = vst [vmem:[#allocation3 + $0x21] sm:$0xff] %v914_v63  ;;  %2355 = vmatmul.mubr.f32.vlgmr.msra.gmra.mrb[4].mxu0 %v912_v59  ;;  %2460 = vmatmul.mubr.f32.vlgmr.msra.gmra.mrb[4].mxu1 %v914_v63 }
 0x2bd   :  { %2781 = vmatpush3.bf16.msra.mxu0 %v3415_v11  ;;  %2877 = vmatpush3.bf16.msra.mxu1 %v3415_v11  ;;  %v934_v11 = vld [vmem:[%s3735_s4 + $0x40] sm:$0xff] }
 0x2be   :  { %2783 = vmatprep.subr.bf16.mxu0 %v2782_v31  ;;  %2879 = vmatprep.subr.bf16.mxu1 %v2782_v31  ;;  %v2794_v35 = vpack.c.bf16 %v935_v42, %v934_v11 }
 0x2c1   :  { %2785 = vmatpush3.bf16.msra.mxu0 %v2782_v31  ;;  %2881 = vmatpush3.bf16.msra.mxu1 %v2782_v31 }
 0x2c2   :  { %v924_v38 = vld [vmem:[#allocation3] sm:$0xff]  ;;  %2787 = vmatprep.subr.bf16.mxu0 %v2786_v34  ;;  %2883 = vmatprep.subr.bf16.mxu1 %v2786_v34  ;;  %v925_v0 = vld [vmem:[#allocation3 + $0x8] sm:$0xff] }
 0x2c3   :  { %v1207_v40 = vld [vmem:[#allocation3 + $0x18] sm:$0xff]  ;;  %2389 = vmatprep.mubr.f32.mxu0 %v924_v38  ;;  %v1208_v1 = vld [vmem:[#allocation3 + $0x20] sm:$0xff]  ;;  %v1112_v24 = vld [vmem:[#allocation3 + $0xa] sm:$0xff] }
 0x2c4   :  { %2494 = vmatprep.mubr.f32.mxu1 %v1207_v40  ;;  %v1111_v5 = vld [vmem:[#allocation3 + $0x2] sm:$0xff]  ;;  %v1361_v6 = vld [vmem:[#allocation3 + $0x1a] sm:$0xff] }
 0x2c5   :  { %2789 = vmatpush3.bf16.msra.mxu0 %v2786_v34  ;;  %2885 = vmatpush3.bf16.msra.mxu1 %v2786_v34  ;;  %v1362_v25 = vld [vmem:[#allocation3 + $0x22] sm:$0xff] }
 0x2c6   :  { %2791 = vmatprep.subr.bf16.mxu0 %v2790_v41  ;;  %2887 = vmatprep.subr.bf16.mxu1 %v2790_v41 }
 0x2c9   :  { %2793 = vmatpush3.bf16.msra.mxu0 %v2790_v41  ;;  %2889 = vmatpush3.bf16.msra.mxu1 %v2790_v41 }
 0x2ca   :  { %2795 = vmatprep.subr.bf16.mxu0 %v2794_v35  ;;  %2891 = vmatprep.subr.bf16.mxu1 %v2794_v35 }
 0x2cd   :  { %2797 = vmatpush3.bf16.msra.mxu0 %v2794_v35  ;;  %2893 = vmatpush3.bf16.msra.mxu1 %v2794_v35 }
 0x2ce   :  { %2799 = vmatprep.subr.bf16.mxu0 %v2798_v45  ;;  %2895 = vmatprep.subr.bf16.mxu1 %v2798_v45 }
 0x2d1   :  { %2801 = vmatpush3.bf16.msra.mxu0 %v2798_v45  ;;  %2897 = vmatpush3.bf16.msra.mxu1 %v2798_v45 }
 0x2d2   :  { %2803 = vmatprep.subr.bf16.mxu0 %v2802_v48  ;;  %2899 = vmatprep.subr.bf16.mxu1 %v2802_v48 }
 0x2d5   :  { %2805 = vmatpush3.bf16.msra.mxu0 %v2802_v48  ;;  %2901 = vmatpush3.bf16.msra.mxu1 %v2802_v48 }
 0x2d6   :  { %2807 = vmatprep.subr.bf16.mxu0 %v2806_v39  ;;  %2903 = vmatprep.subr.bf16.mxu1 %v2806_v39 }
 0x2d9   :  { %2809 = vmatpush3.bf16.msra.mxu0 %v2806_v39  ;;  %2905 = vmatpush3.bf16.msra.mxu1 %v2806_v39 }
 0x2da   :  { %2811 = vmatprep.subr.bf16.mxu0 %v2810_v53  ;;  %2907 = vmatprep.subr.bf16.mxu1 %v2810_v53 }
 0x2dc   :  { %2390 = vmatmul.mubr.f32.vlgmr.msra.gmra.mrb[4].mxu0 %v925_v0  ;;  %2495 = vmatmul.mubr.f32.vlgmr.msra.gmra.mrb[4].mxu1 %v1208_v1  ;;  %v1441_v0 = vld [vmem:[%s3737_s6] sm:$0x1] }
 0x2dd   :  { %2813 = vmatpush3.bf16.msra.mxu0 %v2810_v53  ;;  %2424 = vmatprep.mubr.f32.mxu0 %v1111_v5 }
 0x2de   :  { %2909 = vmatpush3.bf16.msra.mxu1 %v2810_v53  ;;  %2529 = vmatprep.mubr.f32.mxu1 %v1361_v6 }
 0x2df   :  { %2815 = vmatprep.subr.bf16.mxu0 %v2814_v2  ;;  %2911 = vmatprep.subr.bf16.mxu1 %v2814_v2 }
 0x2e1   :  { %2817 = vmatpush3.bf16.msra.mxu0 %v2814_v2 }
 0x2e2   :  { %2913 = vmatpush3.bf16.msra.mxu1 %v2814_v2  ;;  %2819 = vmatprep.subr.bf16.mxu0 %v2818_v7 }
 0x2e3   :  { %2915 = vmatprep.subr.bf16.mxu1 %v2818_v7 }
 0x2e5   :  { %2821 = vmatpush3.bf16.msra.mxu0 %v2818_v7 }
 0x2e6   :  { %2917 = vmatpush3.bf16.msra.mxu1 %v2818_v7  ;;  %2823 = vmatprep.subr.bf16.mxu0 %v2822_v10 }
 0x2e7   :  { %2919 = vmatprep.subr.bf16.mxu1 %v2822_v10 }
 0x2e9   :  { %2825 = vmatpush3.bf16.msra.mxu0 %v2822_v10 }
 0x2ea   :  { %2921 = vmatpush3.bf16.msra.mxu1 %v2822_v10  ;;  %2827 = vmatprep.subr.bf16.mxu0 %v2826_v14 }
 0x2eb   :  { %2923 = vmatprep.subr.bf16.mxu1 %v2826_v14 }
 0x2ed   :  { %2829 = vmatpush3.bf16.msra.mxu0 %v2826_v14 }
 0x2ee   :  { %2925 = vmatpush3.bf16.msra.mxu1 %v2826_v14  ;;  %2831 = vmatprep.subr.bf16.mxu0 %v2830_v17 }
 0x2ef   :  { %2927 = vmatprep.subr.bf16.mxu1 %v2830_v17 }
 0x2f1   :  { %2833 = vmatpush3.bf16.msra.mxu0 %v2830_v17 }
 0x2f2   :  { %2929 = vmatpush3.bf16.msra.mxu1 %v2830_v17  ;;  %2835 = vmatprep.subr.bf16.mxu0 %v2834_v20 }
 0x2f3   :  { %2931 = vmatprep.subr.bf16.mxu1 %v2834_v20 }
 0x2f5   :  { %2837 = vmatpush3.bf16.msra.mxu0 %v2834_v20 }
 0x2f6   :  { %2933 = vmatpush3.bf16.msra.mxu1 %v2834_v20  ;;  %2839 = vmatprep.subr.bf16.mxu0 %v2838_v23 }
 0x2f7   :  { %2935 = vmatprep.subr.bf16.mxu1 %v2838_v23 }
 0x2f9   :  { %2841 = vmatpush3.bf16.msra.mxu0 %v2838_v23 }
 0x2fa   :  { %2937 = vmatpush3.bf16.msra.mxu1 %v2838_v23  ;;  %2938 = vmatprep.subr.bf16.mxu0 %v3026_v56 }
 0x2fb   :  { %2962 = vmatprep.subr.bf16.mxu1 %v3026_v56 }
 0x2fc   :  { %2425 = vmatmul.mubr.f32.vlgmr.msra.gmra.mrb[4].mxu0 %v1112_v24 }
 0x2fd   :  { %2530 = vmatmul.mubr.f32.vlgmr.msra.gmra.mrb[4].mxu1 %v1362_v25  ;;  %2940 = vmatpush3.bf16.msk.msra.mxu0 %vm3194_vm3, %v3027_v58 }
 0x2fe   :  { %2964 = vmatpush3.bf16.msk.msra.mxu1 %vm3194_vm3, %v3027_v58  ;;  %2941 = vmatprep.subr.bf16.mxu0 %v3026_v56 }
 0x2ff   :  { %2965 = vmatprep.subr.bf16.mxu1 %v3026_v56  ;;  %2564 = vmatprep.mubr.msk.f32.mxu0 %vm3028_vm4, %v3025_v3 }
 0x300   :  { %2599 = vmatprep.mubr.msk.f32.mxu1 %vm3028_vm4, %v3025_v3 }
 0x301   :  { %2943 = vmatpush3.bf16.msk.msra.mxu0 %vm3194_vm3, %v3027_v58 }
 0x302   :  { %2967 = vmatpush3.bf16.msk.msra.mxu1 %vm3194_vm3, %v3027_v58  ;;  %2944 = vmatprep.subr.bf16.mxu0 %v3026_v56 }
 0x303   :  { %2968 = vmatprep.subr.bf16.mxu1 %v3026_v56 }
 0x305   :  { %2946 = vmatpush3.bf16.msk.msra.mxu0 %vm3194_vm3, %v3027_v58 }
 0x306   :  { %2970 = vmatpush3.bf16.msk.msra.mxu1 %vm3194_vm3, %v3027_v58  ;;  %2947 = vmatprep.subr.bf16.mxu0 %v3026_v56 }
 0x307   :  { %2971 = vmatprep.subr.bf16.mxu1 %v3026_v56 }
 0x309   :  { %2949 = vmatpush3.bf16.msk.msra.mxu0 %vm3194_vm3, %v3027_v58 }
 0x30a   :  { %2973 = vmatpush3.bf16.msk.msra.mxu1 %vm3194_vm3, %v3027_v58  ;;  %2950 = vmatprep.subr.bf16.mxu0 %v3026_v56 }
 0x30b   :  { %2974 = vmatprep.subr.bf16.mxu1 %v3026_v56 }
 0x30d   :  { %2952 = vmatpush3.bf16.msk.msra.mxu0 %vm3194_vm3, %v3027_v58 }
 0x30e   :  { %2976 = vmatpush3.bf16.msk.msra.mxu1 %vm3194_vm3, %v3027_v58  ;;  %2953 = vmatprep.subr.bf16.mxu0 %v3026_v56 }
 0x30f   :  { %2977 = vmatprep.subr.bf16.mxu1 %v3026_v56 }
 0x311   :  { %2955 = vmatpush3.bf16.msk.msra.mxu0 %vm3194_vm3, %v3027_v58 }
 0x312   :  { %2979 = vmatpush3.bf16.msk.msra.mxu1 %vm3194_vm3, %v3027_v58  ;;  %2956 = vmatprep.subr.bf16.mxu0 %v3026_v56 }
 0x313   :  { %2980 = vmatprep.subr.bf16.mxu1 %v3026_v56 }
 0x315   :  { %2958 = vmatpush3.bf16.msk.msra.mxu0 %vm3194_vm3, %v3027_v58 }
 0x316   :  { %2982 = vmatpush3.bf16.msk.msra.mxu1 %vm3194_vm3, %v3027_v58  ;;  %2959 = vmatprep.subr.bf16.mxu0 %v3026_v56 }
 0x317   :  { %2983 = vmatprep.subr.bf16.mxu1 %v3026_v56 }
 0x319   :  { %2961 = vmatpush3.bf16.msk.msra.mxu0 %vm3194_vm3, %v3027_v58 }
 0x31a   :  { %2985 = vmatpush3.bf16.msk.msra.mxu1 %vm3194_vm3, %v3027_v58  ;;  %vm3742_vm3 = vcmask 261120  }
 0x31b   :  { %vm3743_vm4 = vmmov %vm3742_vm3 }
 0x3cf   :  { %v3625_v3 = vpop.f32.mrb[4].mxu0 }
 0x3d0   :  { %v1443_v26 = vmul.f32 %v3625_v3, %v3625_v3  ;;  %v3629_v27 = vpop.f32.mrb[4].mxu1  ;;  %v3631_v28 = vpop.f32.mrb[5].mxu0 }
 0x3d1   :  { %v1442_v56 = vmul.f32 %v3631_v28, %v3631_v28  ;;  %v1446_v62 = vadd.f32 %v3625_v3, %v3631_v28  ;;  %v3637_v29 = vpop.f32.mrb[5].mxu1  ;;  %v1445_v30 = vmul.f32 %v3629_v27, %v3629_v27 }
 0x3d2   :  { %v1444_v57 = vmul.f32 %v3637_v29, %v3637_v29 }
 0x3d3   :  { %v1455_v59 = vadd.f32 %v1443_v26, %v1442_v56  ;;  %v1447_v58 = vadd.f32 %v1446_v62, %v3637_v29 }
 0x3d5   :  { %v1448_v63 = vadd.f32 %v3629_v27, %v1447_v58  ;;  %v1456_v31 = vadd.f32 %v1455_v59, %v1444_v57 }
 0x3d7   :  { %v1449_v60 = vrot.slane %v1448_v63, 4  ;;  %v1457_v32 = vadd.f32 %v1456_v31, %v1445_v30 }
 0x3d9   :  { %v1450_v34 = vadd.f32 %v1449_v60, %v1448_v63  ;;  %v1458_v36 = vrot.slane %v1457_v32, 4 }
 0x3db   :  { %v1451_v37 = vrot.slane %v1450_v34, 2  ;;  %v1459_v38 = vadd.f32 %v1458_v36, %v1457_v32 }
 0x3dd   :  { %v1452_v40 = vadd.f32 %v1451_v37, %v1450_v34  ;;  %v1460_v41 = vrot.slane %v1459_v38, 2 }
 0x3df   :  { %v1453_v11 = vrot.slane %v1452_v40, 1  ;;  %v1461_v42 = vadd.f32 %v1460_v41, %v1459_v38 }
 0x3e1   :  { %v1454_v35 = vadd.f32 %v1453_v11, %v1452_v40  ;;  %v1462_v43 = vrot.slane %v1461_v42, 1 }
 0x3e3   :  { %2565 = vmatmul.mubr.f32.vlgmr.msra.gmra.mrb[6].mxu0 %v1454_v35  ;;  %v1463_v44 = vadd.f32 %v1462_v43, %v1461_v42 }
 0x3e5   :  { %2600 = vmatmul.mubr.f32.vlgmr.msra.gmra.mrb[6].mxu1 %v1463_v44 }
 0x4b6   :  { %v1530_v45 = vpop.f32.mrb[6].mxu0 }
 0x4b7   :  { %v1604_v46 = vmul.f32 0.001953125, %v1530_v45  ;;  %v2566_v47 = vpop.f32.mrb[7].mxu0 }
 0x4b8   :  { %v1600_v48 = vpop.f32.mrb[6].mxu1 }
 0x4b9   :  { %v1606_v49 = vmul.f32 %v1604_v46, %v1604_v46  ;;  %v1605_v50 = vmul.f32 0.001953125, %v1600_v48  ;;  %v2601_v39 = vpop.f32.mrb[7].mxu1 }
 0x4bb   :  { %v1607_v51 = vsub.f32 %v1605_v50, %v1606_v49 }
 0x4bd   :  { %v1608_v52 = vmax.f32 %v1607_v51, 0.0 }
 0x4bf   :  { %v1609_v53 = vadd.f32 1e-05, %v1608_v52 }
 0x4c1   :  { %3023 = vrsqrt.f32 %v1609_v53 }
 0x4cb   :  { %v3024_v55 = vpop.eup %3023 }
 0x4cc   :  { %v1611_v61 = vmul.f32 %v3024_v55, %v1440_v54 }
 0x4ce   :  { %v1612_v1 = vmul.f32 %v1611_v61, %v1604_v46  ;;  %v1618_v2 = vrot.slane %v1611_v61, %v3291_v33 }
 0x4d0   :  { %v1613_v4 = vsub.f32 %v1441_v0, %v1612_v1  ;;  %1622 = vrot.lane.b32.xlu1 %v1618_v2, %s3031_s3  ;;  %1619 = vrot.lane.b32.xlu0 %v1618_v2, %s3030_s2 }
 0x4d2   :  { %v1683_v5 = vrot.slane %v1613_v4, %v3291_v33 }
 0x4d4   :  { %1625 = vrot.lane.b32.xlu0 %v1618_v2, %s3029_s12  ;;  %1684 = vrot.lane.b32.xlu1 %v1683_v5, %s3030_s2 }
 0x4d8   :  { %1628 = vrot.lane.b32.xlu0 %v1618_v2, %s3032_s13  ;;  %1687 = vrot.lane.b32.xlu1 %v1683_v5, %s3031_s3 }
 0x4dc   :  { %1631 = vrot.lane.b32.xlu0 %v1618_v2, %s3033_s14  ;;  %1690 = vrot.lane.b32.xlu1 %v1683_v5, %s3029_s12 }
 0x4e0   :  { %1634 = vrot.lane.b32.xlu0 %v1618_v2, %s3034_s15  ;;  %1693 = vrot.lane.b32.xlu1 %v1683_v5, %s3032_s13 }
 0x4e4   :  { %1637 = vrot.lane.b32.xlu0 %v1618_v2, %s3035_s20  ;;  %1696 = vrot.lane.b32.xlu1 %v1683_v5, %s3033_s14 }
 0x4e8   :  { %1640 = vrot.lane.b32.xlu0 %v1618_v2, %s3036_s0  ;;  %1699 = vrot.lane.b32.xlu1 %v1683_v5, %s3034_s15 }
 0x4ec   :  { %1643 = vrot.lane.b32.xlu0 %v1618_v2, %s3037_s29  ;;  %1702 = vrot.lane.b32.xlu1 %v1683_v5, %s3035_s20 }
 0x4f0   :  { %1646 = vrot.lane.b32.xlu0 %v1618_v2, %s3038_s10  ;;  %1705 = vrot.lane.b32.xlu1 %v1683_v5, %s3036_s0 }
 0x4f4   :  { %1649 = vrot.lane.b32.xlu0 %v1618_v2, %s3039_s19  ;;  %1708 = vrot.lane.b32.xlu1 %v1683_v5, %s3037_s29 }
 0x4f8   :  { %1652 = vrot.lane.b32.xlu0 %v1618_v2, %s3040_s25  ;;  %1711 = vrot.lane.b32.xlu1 %v1683_v5, %s3038_s10 }
 0x4fc   :  { %1655 = vrot.lane.b32.xlu0 %v1618_v2, %s3041_s8  ;;  %1714 = vrot.lane.b32.xlu1 %v1683_v5, %s3039_s19 }
 0x500   :  { %1658 = vrot.lane.b32.xlu0 %v1618_v2, %s3042_s17  ;;  %1717 = vrot.lane.b32.xlu1 %v1683_v5, %s3040_s25 }
 0x504   :  { %1661 = vrot.lane.b32.xlu0 %v1618_v2, %s3043_s24  ;;  %1720 = vrot.lane.b32.xlu1 %v1683_v5, %s3041_s8 }
 0x508   :  { %1723 = vrot.lane.b32.xlu0 %v1683_v5, %s3042_s17  ;;  %1726 = vrot.lane.b32.xlu1 %v1683_v5, %s3043_s24 }
 0x542   :  { %v1623_v6 = vpop.permute.xlu1 %1622  ;;  %v1620_v7 = vpop.permute.xlu0 %1619 }
 0x543   :  { %v1664_v56 = vsel %vm801_vm5, %v1611_v61, %v1620_v7 }
 0x544   :  { %v1665_v62 = vsel %vm803_vm6, %v1664_v56, %v1623_v6 }
 0x546   :  { %v1626_v8 = vpop.permute.xlu0 %1625  ;;  %v1685_v9 = vpop.permute.xlu1 %1684 }
 0x547   :  { %v1666_v58 = vsel %vm805_vm7, %v1665_v62, %v1626_v8  ;;  %v1729_v31 = vsel %vm801_vm5, %v1613_v4, %v1685_v9 }
 0x54a   :  { %v1629_v10 = vpop.permute.xlu0 %1628  ;;  %v1688_v12 = vpop.permute.xlu1 %1687 }
 0x54b   :  { %v1667_v30 = vsel %vm3742_vm3, %v1666_v58, %v1629_v10  ;;  %v1730_v36 = vsel %vm803_vm6, %v1729_v31, %v1688_v12 }
 0x54e   :  { %v1632_v13 = vpop.permute.xlu0 %1631  ;;  %v1691_v14 = vpop.permute.xlu1 %1690 }
 0x54f   :  { %v1668_v63 = vsel %vm809_vm9, %v1667_v30, %v1632_v13  ;;  %v1731_v38 = vsel %vm805_vm7, %v1730_v36, %v1691_v14 }
 0x552   :  { %v1635_v15 = vpop.permute.xlu0 %1634  ;;  %v1694_v16 = vpop.permute.xlu1 %1693 }
 0x553   :  { %v1669_v60 = vsel %vm811_vm10, %v1668_v63, %v1635_v15  ;;  %v1732_v41 = vsel %vm3743_vm4, %v1731_v38, %v1694_v16 }
 0x556   :  { %v1638_v17 = vpop.permute.xlu0 %1637  ;;  %v1697_v18 = vpop.permute.xlu1 %1696 }
 0x557   :  { %v1670_v37 = vsel %vm813_vm11, %v1669_v60, %v1638_v17  ;;  %v1733_v42 = vsel %vm809_vm9, %v1732_v41, %v1697_v18 }
 0x55a   :  { %v1641_v19 = vpop.permute.xlu0 %1640  ;;  %v1700_v20 = vpop.permute.xlu1 %1699 }
 0x55b   :  { %v1671_v40 = vsel %vm31_vm1, %v1670_v37, %v1641_v19  ;;  %v1734_v45 = vsel %vm811_vm10, %v1733_v42, %v1700_v20 }
 0x55e   :  { %v1644_v21 = vpop.permute.xlu0 %1643  ;;  %v1703_v22 = vpop.permute.xlu1 %1702 }
 0x55f   :  { %v1672_v11 = vsel %vm816_vm12, %v1671_v40, %v1644_v21  ;;  %v1735_v47 = vsel %vm813_vm11, %v1734_v45, %v1703_v22 }
 0x562   :  { %v1647_v23 = vpop.permute.xlu0 %1646  ;;  %v1706_v24 = vpop.permute.xlu1 %1705 }
 0x563   :  { %v1673_v35 = vsel %vm818_vm13, %v1672_v11, %v1647_v23  ;;  %v1736_v49 = vsel %vm31_vm1, %v1735_v47, %v1706_v24 }
 0x566   :  { %v1650_v25 = vpop.permute.xlu0 %1649  ;;  %v1709_v26 = vpop.permute.xlu1 %1708 }
 0x567   :  { %v1674_v46 = vsel %vm820_vm14, %v1673_v35, %v1650_v25  ;;  %v1737_v39 = vsel %vm816_vm12, %v1736_v49, %v1709_v26 }
 0x56a   :  { %v1653_v59 = vpop.permute.xlu0 %1652  ;;  %v1712_v57 = vpop.permute.xlu1 %1711 }
 0x56b   :  { %v1675_v48 = vsel %vm822_vm15, %v1674_v46, %v1653_v59  ;;  %v1738_v54 = vsel %vm818_vm13, %v1737_v39, %v1712_v57 }
 0x56e   :  { %v1656_v32 = vpop.permute.xlu0 %1655  ;;  %v1715_v34 = vpop.permute.xlu1 %1714 }
 0x56f   :  { %v1676_v50 = vsel %vm824_vm0, %v1675_v48, %v1656_v32  ;;  %v1739_v61 = vsel %vm820_vm14, %v1738_v54, %v1715_v34 }
 0x572   :  { %v1659_v43 = vpop.permute.xlu0 %1658  ;;  %v1718_v44 = vpop.permute.xlu1 %1717 }
 0x573   :  { %v1677_v51 = vsel %vm826_vm2, %v1676_v50, %v1659_v43  ;;  %v1740_v1 = vsel %vm822_vm15, %v1739_v61, %v1718_v44 }
 0x576   :  { %v1662_v52 = vpop.permute.xlu0 %1661  ;;  %v1721_v53 = vpop.permute.xlu1 %1720 }
 0x577   :  { %v1678_v55 = vsel %vm828_vm8, %v1677_v51, %v1662_v52  ;;  %v1741_v2 = vsel %vm824_vm0, %v1740_v1, %v1721_v53 }
 0x578   :  { %v1747_v0 = vrot.slane %v1678_v55, %v3291_v33 }
 0x57a   :  { %v1724_v4 = vpop.permute.xlu0 %1723  ;;  %v1727_v5 = vpop.permute.xlu1 %1726  ;;  %v1748_v7 = vmul.f32 %v1747_v0, %v3631_v28  ;;  %v1749_v9 = vmul.f32 %v3625_v3, %v1747_v0  ;;  %v1750_v10 = vmul.f32 %v1747_v0, %v3637_v29  ;;  %v1751_v12 = vmul.f32 %v3629_v27, %v1747_v0 }
 0x57b   :  { %v1742_v6 = vsel %vm826_vm2, %v1741_v2, %v1724_v4 }
 0x57c   :  { %v1743_v8 = vsel %vm828_vm8, %v1742_v6, %v1727_v5 }
 0x57d   :  { %v1755_v13 = vrot.slane %v1743_v8, %v3291_v33 }
 0x57f   :  { %v1756_v14 = vadd.f32 %v1755_v13, %v1748_v7  ;;  %v1757_v15 = vadd.f32 %v1755_v13, %v1749_v9  ;;  %v1758_v16 = vadd.f32 %v1755_v13, %v1750_v10  ;;  %v1759_v17 = vadd.f32 %v1755_v13, %v1751_v12 }
 0x581   :  { %v1760_v18 = vmax.f32 %v1756_v14, 0.0  ;;  %v1761_v19 = vmax.f32 %v1757_v15, 0.0  ;;  %v1762_v20 = vmax.f32 %v1758_v16, 0.0  ;;  %v1763_v21 = vmax.f32 %v1759_v17, 0.0 }
 0x583   :  { %1764 = vst [vmem:[%s3738_s7] sm:$0xff] %v1760_v18  ;;  %1765 = vst [vmem:[%s3738_s7 + $0x8] sm:$0xff] %v1761_v19 }
 0x584   :  { %1900 = vst [vmem:[%s3738_s7 + $0x10] sm:$0xff] %v1762_v20  ;;  %1901 = vst [vmem:[%s3738_s7 + $0x18] sm:$0xff] %v1763_v21 }

</bundles_post_ra>
